<compile_context>
chip_gen: v7x
topology: tpu7x:2x2x1
jax: 0.10.0
libtpu: 0.0.40
codegen_flags: <defaults>
</compile_context>

<pallas_src>
import math
import jax
import jax.numpy as jnp
from jax.experimental import pallas as pl
from jax.experimental.pallas import tpu as pltpu

# ---------------- model dimensions (scaled-down but structure-faithful) --------
HALF     = 64            # stands in for 1024 (per-modality channels)
N_FEAT   = 2 * HALF      # stands in for 2048 (n_feature == embed_dim)
EMBED    = N_FEAT        # embed_dim
ATTN_MID = 32            # stands in for 512 inside the attention head
N_CLASS  = 8             # -> classifier emits N_CLASS + 1 channels
NCLS     = N_CLASS + 1
BATCH    = 2
SEQ      = 16            # max_seqlen
T_OPT    = 4             # opt.t
POOL_K   = SEQ // T_OPT // 2 * 2 + 1   # = 5, AvgPool1d(kernel, 1, pad=k//2)
LEAKY    = 0.2
PACK_W   = 128           # lane-dense packed output width: [cas | attn | v | f | 0]


# ================================ fused kernel =================================

def _delu_fused_kernel(
        x_ref,
        # AWM (both modalities packed on the 128-lane axis)
        cc_w, cc_b, bw_w, bw_b, a1_w, a1_b, a2_w, a2_b, a3_w, a3_b,
        # fusion + classifier
        fus_w, fus_b, c1_w, c1_b, c2_w, c2_b,
        # outputs
        feat_ref, pack_ref):
    n = x_ref.shape[1]
    x = x_ref[0]                               # (N, 128) f32 = [xv | xf]

    def leaky(v):
        return jnp.where(v >= 0.0, v, LEAKY * v)

    def shift_rows(v, d):
        """result[i] = v[i - d]; rows with no source are zero (conv/pool padding)."""
        rolled = pltpu.roll(v, shift=d % n, axis=0)
        row = jax.lax.broadcasted_iota(jnp.int32, v.shape, 0)
        mask = (row >= d) if d > 0 else (row < n + d)
        return jnp.where(mask, rolled, 0.0)

    def mm(a, w):
        # bf16 at the MXU boundary, f32 accumulation.
        return jnp.dot(a.astype(jnp.bfloat16), w,
                       preferred_element_type=jnp.float32)

    def conv1(v, w_ref, b_ref):
        return mm(v, w_ref[...]) + b_ref[...]

    def conv3(v, w_ref, b_ref):
        # 'same' padding handled by roll + edge masks; 3 shifted MXU dots.
        acc = mm(v, w_ref[1])
        acc = acc + mm(shift_rows(v, 1), w_ref[0])
        acc = acc + mm(shift_rows(v, -1), w_ref[2])
        return acc + b_ref[...]

    # ---- AWM, both modalities fused on the 128-lane axis --------------------
    # channel_avg == AdaptiveAvgPool1d(1) over time (per modality half).
    chan = jnp.mean(x, axis=0, keepdims=True)                  # (1,128)=[chan_v|chan_f]
    # k=3 conv with padding=1 on a length-1 sequence -> only the center tap.
    chan_attn = leaky(conv1(chan, cc_w, cc_b))                 # (1,128)
    # bit_wise_attn: anti-block-diag weight wires the cross-modality input
    # (v-branch sees xf, f-branch sees xv) without any lane shuffle.
    bw_attn = leaky(conv3(x, bw_w, bw_b))                      # (N,128)
    filt = jax.nn.sigmoid(bw_attn * chan_attn) * x             # (N,128)=[vfeat|ffeat]
    h = leaky(conv3(filt, a1_w, a1_b))                         # (N,64)=[h_v|h_f]
    h = leaky(conv3(h, a2_w, a2_b))                            # (N,64)
    # k=1 conv to one channel per branch, packed as a (64,2) matmul.
    atn = jax.nn.sigmoid(mm(h, a3_w[...]) + a3_b[...])         # (N,2): [v_atn, f_atn]
    v_atn = atn[:, 0:1]
    f_atn = atn[:, 1:2]

    # ---- fusion + classifier -------------------------------------------------
    # filt is already the channel concat [vfeat | ffeat]; fusion is one matmul.
    nfeat = leaky(conv1(filt, fus_w, fus_b))                   # (N,128)
    feat_ref[0] = nfeat.astype(feat_ref.dtype)                 # dense 128-lane store

    hc = leaky(conv3(nfeat, c1_w, c1_b))                       # (N,128)
    # c2 weight is zero-padded to 128 output lanes: lanes 0..8 = cas, rest = 0.
    cas_wide = conv1(hc, c2_w, c2_b)                           # (N,128)

    # Place [attn | v_atn | f_atn] at lanes NCLS..NCLS+2 with f32 VPU selects.
    # attn is packed UNpooled; pool linearity makes its pooled value equal to
    # 0.5*(pooled v_atn + pooled f_atn), exactly matching the reference.
    col = jax.lax.broadcasted_iota(jnp.int32, (n, PACK_W), 1)
    packed = cas_wide
    packed = jnp.where(col == NCLS,     0.5 * (v_atn + f_atn), packed)
    packed = jnp.where(col == NCLS + 1, v_atn,                 packed)
    packed = jnp.where(col == NCLS + 2, f_atn,                 packed)

    # AvgPool1d(POOL_K, 1, padding=POOL_K//2, count_include_pad=True), applied
    # once to the whole lane-dense slab (it is linear).
    acc = packed
    for d in range(1, POOL_K // 2 + 1):
        acc = acc + shift_rows(packed, d) + shift_rows(packed, -d)
    pack_ref[0] = (acc * (1.0 / POOL_K)).astype(pack_ref.dtype)  # dense 128-lane store


# ============================== host-side wrapper ==============================

def _bcast_spec(shape):
    zeros = (0,) * len(shape)
    return pl.BlockSpec(shape, lambda i: zeros)


def _block_diag(wa, wb):
    """[[wa, 0], [0, wb]] over (Cin, Cout) for a (K, Cin, Cout) weight stack."""
    k, ai, ao = wa.shape
    _, bi, bo = wb.shape
    w = jnp.zeros((k, ai + bi, ao + bo), jnp.float32)
    w = w.at[:, :ai, :ao].set(wa)
    w = w.at[:, ai:, ao:].set(wb)
    return w


def _anti_block_diag(wa, wb):
    """Applied to [xv | xf]: output = [xf @ wa | xv @ wb] (cross-modality)."""
    k, ai, ao = wa.shape
    _, bi, bo = wb.shape
    w = jnp.zeros((k, bi + ai, ao + bo), jnp.float32)
    w = w.at[:, bi:, :ao].set(wa)      # xf rows -> v-branch output columns
    w = w.at[:, :bi, ao:].set(wb)      # xv rows -> f-branch output columns
    return w


def _prepare_kernel_weights(p):
    """Pack per-branch params into lane-dense, MXU-ready kernel arguments."""
    bf = lambda a: a.astype(jnp.bfloat16)
    v, f = p["awm_v"], p["awm_f"]
    cat = lambda a, b: jnp.concatenate([a, b], axis=-1)

    cc_w = _block_diag(v["w_cc"][1:2], f["w_cc"][1:2])[0]   # (128,128) center taps
    cc_b = cat(v["b_cc"], f["b_cc"])                        # (1,128)
    bw_w = _anti_block_diag(v["w_bw"], f["w_bw"])           # (3,128,128)
    bw_b = cat(v["b_bw"], f["b_bw"])                        # (1,128)
    a1_w = _block_diag(v["w_a1"], f["w_a1"])                # (3,128,64)
    a1_b = cat(v["b_a1"], f["b_a1"])                        # (1,64)
    a2_w = _block_diag(v["w_a2"], f["w_a2"])                # (3,64,64)
    a2_b = cat(v["b_a2"], f["b_a2"])                        # (1,64)
    a3_w = _block_diag(v["w_a3"], f["w_a3"])[0]             # (64,2)
    a3_b = cat(v["b_a3"], f["b_a3"])                        # (1,2)

    fus_w, fus_b = p["w_fus"][0], p["b_fus"]                # (128,128), (1,128)
    c1_w, c1_b = p["w_c1"], p["b_c1"]                       # (3,128,128), (1,128)
    c2_w = jnp.zeros((EMBED, PACK_W), jnp.float32).at[:, :NCLS].set(p["w_c2"][0])
    c2_b = jnp.zeros((1, PACK_W), jnp.float32).at[:, :NCLS].set(p["b_c2"])

    return [bf(cc_w), cc_b, bf(bw_w), bw_b, bf(a1_w), a1_b, bf(a2_w), a2_b,
            bf(a3_w), a3_b, bf(fus_w), fus_b, bf(c1_w), c1_b, bf(c2_w), c2_b]


def delu_act_forward(inputs, params):
    """inputs: (B, N, 2*HALF) -- same as the PyTorch forward's `inputs`."""
    B, N, C = inputs.shape
    ws = _prepare_kernel_weights(params)

    in_specs = [pl.BlockSpec((1, N, C), lambda i: (i, 0, 0))]
    in_specs += [_bcast_spec(w.shape) for w in ws]

    out_shape = (jax.ShapeDtypeStruct((B, N, N_FEAT), jnp.float32),
                 jax.ShapeDtypeStruct((B, N, PACK_W), jnp.float32))
    out_specs = (pl.BlockSpec((1, N, N_FEAT), lambda i: (i, 0, 0)),
                 pl.BlockSpec((1, N, PACK_W), lambda i: (i, 0, 0)))

    feat, packed = pl.pallas_call(
        _delu_fused_kernel,
        out_shape=out_shape,
        grid=(B,),
        in_specs=in_specs,
        out_specs=out_specs,
        compiler_params=pltpu.CompilerParams(
            dimension_semantics=("parallel",)),
    )(inputs, *ws)

    cas   = packed[..., :NCLS]
    attn  = packed[..., NCLS:NCLS + 1]
    v_atn = packed[..., NCLS + 1:NCLS + 2]
    f_atn = packed[..., NCLS + 2:NCLS + 3]
    extra_loss = jnp.float32(0.0)   # TODO(synk): DDG_Net auxiliary graph loss not provided

    # already (B, N, C) == PyTorch's .transpose(-1, -2) outputs
    return {"feat": feat, "cas": cas, "attn": attn,
            "v_atn": v_atn, "f_atn": f_atn, "extra_loss": extra_loss}


# ===================== pure-JAX reference (per-branch weights) =================

def delu_act_reference(inputs, params):
    """PyTorch-faithful math (eval-mode dropout), bf16 matmuls to match the MXU."""
    def mm(a, w):
        return jnp.dot(a.astype(jnp.bfloat16), w.astype(jnp.bfloat16),
                       preferred_element_type=jnp.float32)

    def leaky(v):
        return jnp.where(v >= 0.0, v, LEAKY * v)

    def conv1(v, w, b):
        return mm(v, w) + b

    def conv3(v, w, b):
        n = v.shape[0]
        vp = jnp.pad(v, ((1, 1), (0, 0)))
        return mm(vp[0:n], w[0]) + mm(vp[1:n + 1], w[1]) + mm(vp[2:n + 2], w[2]) + b

    def pool(v):
        n, r = v.shape[0], POOL_K // 2
        vp = jnp.pad(v, ((r, r), (0, 0)))
        acc = jnp.zeros_like(v)
        for d in range(POOL_K):
            acc = acc + vp[d:d + n]
        return acc / POOL_K

    def awm(xp, yp, s):
        chan = jnp.mean(xp, axis=0, keepdims=True)
        chan_attn = leaky(conv1(chan, s["w_cc"][1], s["b_cc"]))   # len-1 seq: center tap
        bw = leaky(conv3(yp, s["w_bw"], s["b_bw"]))
        filt = jax.nn.sigmoid(bw * chan_attn) * xp
        h = leaky(conv3(filt, s["w_a1"], s["b_a1"]))
        h = leaky(conv3(h, s["w_a2"], s["b_a2"]))
        atn = jax.nn.sigmoid(conv1(h, s["w_a3"][0], s["b_a3"]))
        return atn, filt

    def one(x):
        xv, xf = x[:, :HALF], x[:, HALF:]
        v_atn, vfeat = awm(xv, xf, params["awm_v"])
        f_atn, ffeat = awm(xf, xv, params["awm_f"])
        nfeat = leaky(conv1(jnp.concatenate([vfeat, ffeat], -1),
                            params["w_fus"][0], params["b_fus"]))
        hc = leaky(conv3(nfeat, params["w_c1"], params["b_c1"]))
        cas = conv1(hc, params["w_c2"][0], params["b_c2"])
        attn = 0.5 * (v_atn + f_atn)
        return nfeat, pool(cas), pool(attn), pool(v_atn), pool(f_atn)

    feat, cas, attn, v_atn, f_atn = jax.vmap(one)(inputs)
    return {"feat": feat, "cas": cas, "attn": attn, "v_atn": v_atn, "f_atn": f_atn}


# ================================ parameter init ===============================

def _kaiming_uniform(key, K, Cin, Cout):
    # torch.nn.init.kaiming_uniform_ (a=0, fan_in, leaky_relu): bound = sqrt(6/fan_in)
    fan_in = Cin * K
    bound = math.sqrt(6.0 / fan_in)
    # stored as (K, Cin, Cout) to match the kernel's matmul layout
    return jax.random.uniform(key, (K, Cin, Cout), jnp.float32, -bound, bound)


def _conv_params(key, K, Cin, Cout):
    w = _kaiming_uniform(key, K, Cin, Cout)
    b = jnp.zeros((1, Cout), jnp.float32)       # bias.data.fill_(0)
    return w, b


def init_params(key):
    keys = jax.random.split(key, 16)
    p = {}
    for tag, ks in (("awm_v", keys[0:5]), ("awm_f", keys[5:10])):
        sub = {}
        sub["w_cc"], sub["b_cc"] = _conv_params(ks[0], 3, HALF, HALF)       # channel_conv
        sub["w_bw"], sub["b_bw"] = _conv_params(ks[1], 3, HALF, HALF)       # bit_wise_attn
        sub["w_a1"], sub["b_a1"] = _conv_params(ks[2], 3, HALF, ATTN_MID)   # attention conv1
        sub["w_a2"], sub["b_a2"] = _conv_params(ks[3], 3, ATTN_MID, ATTN_MID)
        sub["w_a3"], sub["b_a3"] = _conv_params(ks[4], 1, ATTN_MID, 1)
        p[tag] = sub
    p["w_fus"], p["b_fus"] = _conv_params(keys[10], 1, N_FEAT, N_FEAT)      # fusion
    p["w_c1"], p["b_c1"] = _conv_params(keys[11], 3, EMBED, EMBED)          # classifier conv1
    p["w_c2"], p["b_c2"] = _conv_params(keys[12], 1, EMBED, N_CLASS + 1)    # classifier conv2
    return p


# ===================================== main ====================================

if __name__ == "__main__":
    key = jax.random.PRNGKey(0)
    k_in, k_par = jax.random.split(key)
    inputs = jax.random.normal(k_in, (BATCH, SEQ, N_FEAT), jnp.float32)
    params = init_params(k_par)

    fwd = jax.jit(delu_act_forward)
    out = jax.block_until_ready(fwd(inputs, params))

    assert out["feat"].shape == (BATCH, SEQ, N_FEAT)
    assert out["cas"].shape == (BATCH, SEQ, N_CLASS + 1)
    assert out["attn"].shape == (BATCH, SEQ, 1)
    assert out["v_atn"].shape == (BATCH, SEQ, 1)
    assert out["f_atn"].shape == (BATCH, SEQ, 1)

    # numerical check against the pure-JAX reference (same bf16 MXU precision)
    ref = jax.block_until_ready(jax.jit(delu_act_reference)(inputs, params))
    for name in ("feat", "cas", "attn", "v_atn", "f_atn"):
        err = float(jnp.max(jnp.abs(out[name] - ref[name])))
        assert err < 5e-3, f"{name}: max|err| = {err}"

    print("KERNEL_OK")
</pallas_src>

<mosaic_0001>
module attributes {stable_mosaic.version = 11 : i64} {
  func.func @_delu_fused_kernel(%arg0: i32, %arg1: memref<1x16x128xf32, #tpu.memory_space<vmem>>, %arg2: memref<128x128xbf16, #tpu.memory_space<vmem>>, %arg3: memref<1x128xf32, #tpu.memory_space<vmem>>, %arg4: memref<3x128x128xbf16, #tpu.memory_space<vmem>>, %arg5: memref<1x128xf32, #tpu.memory_space<vmem>>, %arg6: memref<3x128x64xbf16, #tpu.memory_space<vmem>>, %arg7: memref<1x64xf32, #tpu.memory_space<vmem>>, %arg8: memref<3x64x64xbf16, #tpu.memory_space<vmem>>, %arg9: memref<1x64xf32, #tpu.memory_space<vmem>>, %arg10: memref<64x2xbf16, #tpu.memory_space<vmem>>, %arg11: memref<1x2xf32, #tpu.memory_space<vmem>>, %arg12: memref<128x128xbf16, #tpu.memory_space<vmem>>, %arg13: memref<1x128xf32, #tpu.memory_space<vmem>>, %arg14: memref<3x128x128xbf16, #tpu.memory_space<vmem>>, %arg15: memref<1x128xf32, #tpu.memory_space<vmem>>, %arg16: memref<128x128xbf16, #tpu.memory_space<vmem>>, %arg17: memref<1x128xf32, #tpu.memory_space<vmem>>, %arg18: memref<1x16x128xf32, #tpu.memory_space<vmem>>, %arg19: memref<1x16x128xf32, #tpu.memory_space<vmem>>) attributes {dimension_semantics = [#tpu.dimension_semantics<parallel>], iteration_bounds = array<i64: 2>, scalar_prefetch = 0 : i64, scratch_operands = 0 : i64, tpu.core_type = #tpu.core_type<tc>, window_params = [{transform_indices = @transform_0, window_bounds = array<i64: 1, 16, 128>}, {pipeline_mode = #tpu.pipeline_mode<synchronous>, transform_indices = @transform_1, window_bounds = array<i64: 128, 128>}, {pipeline_mode = #tpu.pipeline_mode<synchronous>, transform_indices = @transform_2, window_bounds = array<i64: 1, 128>}, {pipeline_mode = #tpu.pipeline_mode<synchronous>, transform_indices = @transform_3, window_bounds = array<i64: 3, 128, 128>}, {pipeline_mode = #tpu.pipeline_mode<synchronous>, transform_indices = @transform_4, window_bounds = array<i64: 1, 128>}, {pipeline_mode = #tpu.pipeline_mode<synchronous>, transform_indices = @transform_5, window_bounds = array<i64: 3, 128, 64>}, {pipeline_mode = #tpu.pipeline_mode<synchronous>, transform_indices = @transform_6, window_bounds = array<i64: 1, 64>}, {pipeline_mode = #tpu.pipeline_mode<synchronous>, transform_indices = @transform_7, window_bounds = array<i64: 3, 64, 64>}, {pipeline_mode = #tpu.pipeline_mode<synchronous>, transform_indices = @transform_8, window_bounds = array<i64: 1, 64>}, {pipeline_mode = #tpu.pipeline_mode<synchronous>, transform_indices = @transform_9, window_bounds = array<i64: 64, 2>}, {pipeline_mode = #tpu.pipeline_mode<synchronous>, transform_indices = @transform_10, window_bounds = array<i64: 1, 2>}, {pipeline_mode = #tpu.pipeline_mode<synchronous>, transform_indices = @transform_11, window_bounds = array<i64: 128, 128>}, {pipeline_mode = #tpu.pipeline_mode<synchronous>, transform_indices = @transform_12, window_bounds = array<i64: 1, 128>}, {pipeline_mode = #tpu.pipeline_mode<synchronous>, transform_indices = @transform_13, window_bounds = array<i64: 3, 128, 128>}, {pipeline_mode = #tpu.pipeline_mode<synchronous>, transform_indices = @transform_14, window_bounds = array<i64: 1, 128>}, {pipeline_mode = #tpu.pipeline_mode<synchronous>, transform_indices = @transform_15, window_bounds = array<i64: 128, 128>}, {pipeline_mode = #tpu.pipeline_mode<synchronous>, transform_indices = @transform_16, window_bounds = array<i64: 1, 128>}, {transform_indices = @transform_17, window_bounds = array<i64: 1, 16, 128>}, {transform_indices = @transform_18, window_bounds = array<i64: 1, 16, 128>}]} {
    %c0 = arith.constant 0 : index
    %c0_0 = arith.constant 0 : index
    %c0_1 = arith.constant 0 : index
    %0 = vector.load %arg1[%c0, %c0_0, %c0_1] : memref<1x16x128xf32, #tpu.memory_space<vmem>>, vector<1x16x128xf32>
    %1 = vector.shape_cast %0 : vector<1x16x128xf32> to vector<16x128xf32>
    %cst = arith.constant dense<0.000000e+00> : vector<128xf32>
    %2 = vector.multi_reduction <add>, %1, %cst [0] : vector<16x128xf32> to vector<128xf32>
    %3 = vector.shape_cast %2 : vector<128xf32> to vector<1x128xf32>
    %cst_2 = arith.constant 1.600000e+01 : f32
    %4 = vector.broadcast %cst_2 : f32 to vector<1x128xf32>
    %5 = arith.divf %3, %4 : vector<1x128xf32>
    %c0_3 = arith.constant 0 : index
    %c0_4 = arith.constant 0 : index
    %6 = vector.load %arg2[%c0_3, %c0_4] : memref<128x128xbf16, #tpu.memory_space<vmem>>, vector<128x128xbf16>
    %7 = arith.truncf %5 : vector<1x128xf32> to vector<1x128xbf16>
    %cst_5 = arith.constant dense<0.000000e+00> : vector<1x128xf32>
    %8 = tpu.matmul %7, %6, %cst_5 {dimension_numbers = #tpu.dot_dimension_numbers<[1], [0], [0], [1], [0, 0, 1, 1], [], []>} : vector<1x128xbf16>, vector<128x128xbf16>, vector<1x128xf32> -> vector<1x128xf32>
    %c0_6 = arith.constant 0 : index
    %c0_7 = arith.constant 0 : index
    %9 = vector.load %arg3[%c0_6, %c0_7] : memref<1x128xf32, #tpu.memory_space<vmem>>, vector<1x128xf32>
    %10 = arith.addf %8, %9 : vector<1x128xf32>
    %cst_8 = arith.constant 0.000000e+00 : f32
    %11 = vector.broadcast %cst_8 : f32 to vector<1x128xf32>
    %12 = arith.cmpf oge, %10, %11 : vector<1x128xf32>
    %cst_9 = arith.constant 2.000000e-01 : f32
    %13 = vector.broadcast %cst_9 : f32 to vector<1x128xf32>
    %14 = arith.mulf %13, %10 : vector<1x128xf32>
    %15 = arith.select %12, %10, %14 : vector<1x128xi1>, vector<1x128xf32>
    %c1 = arith.constant 1 : index
    %c0_10 = arith.constant 0 : index
    %c0_11 = arith.constant 0 : index
    %16 = vector.load %arg4[%c1, %c0_10, %c0_11] : memref<3x128x128xbf16, #tpu.memory_space<vmem>>, vector<1x128x128xbf16>
    %17 = vector.shape_cast %16 : vector<1x128x128xbf16> to vector<128x128xbf16>
    %18 = arith.truncf %1 : vector<16x128xf32> to vector<16x128xbf16>
    %cst_12 = arith.constant dense<0.000000e+00> : vector<16x128xf32>
    %19 = tpu.matmul %18, %17, %cst_12 {dimension_numbers = #tpu.dot_dimension_numbers<[1], [0], [0], [1], [0, 0, 1, 1], [], []>} : vector<16x128xbf16>, vector<128x128xbf16>, vector<16x128xf32> -> vector<16x128xf32>
    %c1_i32 = arith.constant 1 : i32
    %20 = tpu.dynamic_rotate %1 by %c1_i32 dim 0 : vector<16x128xf32>, i32 -> vector<16x128xf32>
    %21 = tpu.iota {dimensions = array<i32: 0>} : vector<16x128xi32>
    %c1_i32_13 = arith.constant 1 : i32
    %22 = vector.broadcast %c1_i32_13 : i32 to vector<16x128xi32>
    %23 = arith.cmpi sge, %21, %22 : vector<16x128xi32>
    %cst_14 = arith.constant 0.000000e+00 : f32
    %24 = vector.broadcast %cst_14 : f32 to vector<16x128xf32>
    %25 = arith.select %23, %20, %24 : vector<16x128xi1>, vector<16x128xf32>
    %c0_15 = arith.constant 0 : index
    %c0_16 = arith.constant 0 : index
    %c0_17 = arith.constant 0 : index
    %26 = vector.load %arg4[%c0_15, %c0_16, %c0_17] : memref<3x128x128xbf16, #tpu.memory_space<vmem>>, vector<1x128x128xbf16>
    %27 = vector.shape_cast %26 : vector<1x128x128xbf16> to vector<128x128xbf16>
    %28 = arith.truncf %25 : vector<16x128xf32> to vector<16x128xbf16>
    %cst_18 = arith.constant dense<0.000000e+00> : vector<16x128xf32>
    %29 = tpu.matmul %28, %27, %cst_18 {dimension_numbers = #tpu.dot_dimension_numbers<[1], [0], [0], [1], [0, 0, 1, 1], [], []>} : vector<16x128xbf16>, vector<128x128xbf16>, vector<16x128xf32> -> vector<16x128xf32>
    %30 = arith.addf %19, %29 : vector<16x128xf32>
    %c15_i32 = arith.constant 15 : i32
    %31 = tpu.dynamic_rotate %1 by %c15_i32 dim 0 : vector<16x128xf32>, i32 -> vector<16x128xf32>
    %32 = tpu.iota {dimensions = array<i32: 0>} : vector<16x128xi32>
    %c15_i32_19 = arith.constant 15 : i32
    %33 = vector.broadcast %c15_i32_19 : i32 to vector<16x128xi32>
    %34 = arith.cmpi slt, %32, %33 : vector<16x128xi32>
    %cst_20 = arith.constant 0.000000e+00 : f32
    %35 = vector.broadcast %cst_20 : f32 to vector<16x128xf32>
    %36 = arith.select %34, %31, %35 : vector<16x128xi1>, vector<16x128xf32>
    %c2 = arith.constant 2 : index
    %c0_21 = arith.constant 0 : index
    %c0_22 = arith.constant 0 : index
    %37 = vector.load %arg4[%c2, %c0_21, %c0_22] : memref<3x128x128xbf16, #tpu.memory_space<vmem>>, vector<1x128x128xbf16>
    %38 = vector.shape_cast %37 : vector<1x128x128xbf16> to vector<128x128xbf16>
    %39 = arith.truncf %36 : vector<16x128xf32> to vector<16x128xbf16>
    %cst_23 = arith.constant dense<0.000000e+00> : vector<16x128xf32>
    %40 = tpu.matmul %39, %38, %cst_23 {dimension_numbers = #tpu.dot_dimension_numbers<[1], [0], [0], [1], [0, 0, 1, 1], [], []>} : vector<16x128xbf16>, vector<128x128xbf16>, vector<16x128xf32> -> vector<16x128xf32>
    %41 = arith.addf %30, %40 : vector<16x128xf32>
    %c0_24 = arith.constant 0 : index
    %c0_25 = arith.constant 0 : index
    %42 = vector.load %arg5[%c0_24, %c0_25] : memref<1x128xf32, #tpu.memory_space<vmem>>, vector<1x128xf32>
    %43 = vector.broadcast %42 : vector<1x128xf32> to vector<16x128xf32>
    %44 = arith.addf %41, %43 : vector<16x128xf32>
    %cst_26 = arith.constant 0.000000e+00 : f32
    %45 = vector.broadcast %cst_26 : f32 to vector<16x128xf32>
    %46 = arith.cmpf oge, %44, %45 : vector<16x128xf32>
    %cst_27 = arith.constant 2.000000e-01 : f32
    %47 = vector.broadcast %cst_27 : f32 to vector<16x128xf32>
    %48 = arith.mulf %47, %44 : vector<16x128xf32>
    %49 = arith.select %46, %44, %48 : vector<16x128xi1>, vector<16x128xf32>
    %50 = vector.broadcast %15 : vector<1x128xf32> to vector<16x128xf32>
    %51 = arith.mulf %49, %50 : vector<16x128xf32>
    %52 = arith.negf %51 : vector<16x128xf32>
    %53 = math.exp %52 : vector<16x128xf32>
    %cst_28 = arith.constant 1.000000e+00 : f32
    %54 = vector.broadcast %cst_28 : f32 to vector<16x128xf32>
    %55 = arith.addf %54, %53 : vector<16x128xf32>
    %56 = arith.divf %54, %55 : vector<16x128xf32>
    %57 = arith.mulf %56, %1 : vector<16x128xf32>
    %c1_29 = arith.constant 1 : index
    %c0_30 = arith.constant 0 : index
    %c0_31 = arith.constant 0 : index
    %58 = vector.load %arg6[%c1_29, %c0_30, %c0_31] : memref<3x128x64xbf16, #tpu.memory_space<vmem>>, vector<1x128x64xbf16>
    %59 = vector.shape_cast %58 : vector<1x128x64xbf16> to vector<128x64xbf16>
    %60 = arith.truncf %57 : vector<16x128xf32> to vector<16x128xbf16>
    %cst_32 = arith.constant dense<0.000000e+00> : vector<16x64xf32>
    %61 = tpu.matmul %60, %59, %cst_32 {dimension_numbers = #tpu.dot_dimension_numbers<[1], [0], [0], [1], [0, 0, 1, 1], [], []>} : vector<16x128xbf16>, vector<128x64xbf16>, vector<16x64xf32> -> vector<16x64xf32>
    %c1_i32_33 = arith.constant 1 : i32
    %62 = tpu.dynamic_rotate %57 by %c1_i32_33 dim 0 : vector<16x128xf32>, i32 -> vector<16x128xf32>
    %63 = tpu.iota {dimensions = array<i32: 0>} : vector<16x128xi32>
    %c1_i32_34 = arith.constant 1 : i32
    %64 = vector.broadcast %c1_i32_34 : i32 to vector<16x128xi32>
    %65 = arith.cmpi sge, %63, %64 : vector<16x128xi32>
    %cst_35 = arith.constant 0.000000e+00 : f32
    %66 = vector.broadcast %cst_35 : f32 to vector<16x128xf32>
    %67 = arith.select %65, %62, %66 : vector<16x128xi1>, vector<16x128xf32>
    %c0_36 = arith.constant 0 : index
    %c0_37 = arith.constant 0 : index
    %c0_38 = arith.constant 0 : index
    %68 = vector.load %arg6[%c0_36, %c0_37, %c0_38] : memref<3x128x64xbf16, #tpu.memory_space<vmem>>, vector<1x128x64xbf16>
    %69 = vector.shape_cast %68 : vector<1x128x64xbf16> to vector<128x64xbf16>
    %70 = arith.truncf %67 : vector<16x128xf32> to vector<16x128xbf16>
    %cst_39 = arith.constant dense<0.000000e+00> : vector<16x64xf32>
    %71 = tpu.matmul %70, %69, %cst_39 {dimension_numbers = #tpu.dot_dimension_numbers<[1], [0], [0], [1], [0, 0, 1, 1], [], []>} : vector<16x128xbf16>, vector<128x64xbf16>, vector<16x64xf32> -> vector<16x64xf32>
    %72 = arith.addf %61, %71 : vector<16x64xf32>
    %c15_i32_40 = arith.constant 15 : i32
    %73 = tpu.dynamic_rotate %57 by %c15_i32_40 dim 0 : vector<16x128xf32>, i32 -> vector<16x128xf32>
    %74 = tpu.iota {dimensions = array<i32: 0>} : vector<16x128xi32>
    %c15_i32_41 = arith.constant 15 : i32
    %75 = vector.broadcast %c15_i32_41 : i32 to vector<16x128xi32>
    %76 = arith.cmpi slt, %74, %75 : vector<16x128xi32>
    %cst_42 = arith.constant 0.000000e+00 : f32
    %77 = vector.broadcast %cst_42 : f32 to vector<16x128xf32>
    %78 = arith.select %76, %73, %77 : vector<16x128xi1>, vector<16x128xf32>
    %c2_43 = arith.constant 2 : index
    %c0_44 = arith.constant 0 : index
    %c0_45 = arith.constant 0 : index
    %79 = vector.load %arg6[%c2_43, %c0_44, %c0_45] : memref<3x128x64xbf16, #tpu.memory_space<vmem>>, vector<1x128x64xbf16>
    %80 = vector.shape_cast %79 : vector<1x128x64xbf16> to vector<128x64xbf16>
    %81 = arith.truncf %78 : vector<16x128xf32> to vector<16x128xbf16>
    %cst_46 = arith.constant dense<0.000000e+00> : vector<16x64xf32>
    %82 = tpu.matmul %81, %80, %cst_46 {dimension_numbers = #tpu.dot_dimension_numbers<[1], [0], [0], [1], [0, 0, 1, 1], [], []>} : vector<16x128xbf16>, vector<128x64xbf16>, vector<16x64xf32> -> vector<16x64xf32>
    %83 = arith.addf %72, %82 : vector<16x64xf32>
    %c0_47 = arith.constant 0 : index
    %c0_48 = arith.constant 0 : index
    %84 = vector.load %arg7[%c0_47, %c0_48] : memref<1x64xf32, #tpu.memory_space<vmem>>, vector<1x64xf32>
    %85 = vector.broadcast %84 : vector<1x64xf32> to vector<16x64xf32>
    %86 = arith.addf %83, %85 : vector<16x64xf32>
    %cst_49 = arith.constant 0.000000e+00 : f32
    %87 = vector.broadcast %cst_49 : f32 to vector<16x64xf32>
    %88 = arith.cmpf oge, %86, %87 : vector<16x64xf32>
    %cst_50 = arith.constant 2.000000e-01 : f32
    %89 = vector.broadcast %cst_50 : f32 to vector<16x64xf32>
    %90 = arith.mulf %89, %86 : vector<16x64xf32>
    %91 = arith.select %88, %86, %90 : vector<16x64xi1>, vector<16x64xf32>
    %c1_51 = arith.constant 1 : index
    %c0_52 = arith.constant 0 : index
    %c0_53 = arith.constant 0 : index
    %92 = vector.load %arg8[%c1_51, %c0_52, %c0_53] : memref<3x64x64xbf16, #tpu.memory_space<vmem>>, vector<1x64x64xbf16>
    %93 = vector.shape_cast %92 : vector<1x64x64xbf16> to vector<64x64xbf16>
    %94 = arith.truncf %91 : vector<16x64xf32> to vector<16x64xbf16>
    %cst_54 = arith.constant dense<0.000000e+00> : vector<16x64xf32>
    %95 = tpu.matmul %94, %93, %cst_54 {dimension_numbers = #tpu.dot_dimension_numbers<[1], [0], [0], [1], [0, 0, 1, 1], [], []>} : vector<16x64xbf16>, vector<64x64xbf16>, vector<16x64xf32> -> vector<16x64xf32>
    %c1_i32_55 = arith.constant 1 : i32
    %96 = tpu.dynamic_rotate %91 by %c1_i32_55 dim 0 : vector<16x64xf32>, i32 -> vector<16x64xf32>
    %97 = tpu.iota {dimensions = array<i32: 0>} : vector<16x64xi32>
    %c1_i32_56 = arith.constant 1 : i32
    %98 = vector.broadcast %c1_i32_56 : i32 to vector<16x64xi32>
    %99 = arith.cmpi sge, %97, %98 : vector<16x64xi32>
    %cst_57 = arith.constant 0.000000e+00 : f32
    %100 = vector.broadcast %cst_57 : f32 to vector<16x64xf32>
    %101 = arith.select %99, %96, %100 : vector<16x64xi1>, vector<16x64xf32>
    %c0_58 = arith.constant 0 : index
    %c0_59 = arith.constant 0 : index
    %c0_60 = arith.constant 0 : index
    %102 = vector.load %arg8[%c0_58, %c0_59, %c0_60] : memref<3x64x64xbf16, #tpu.memory_space<vmem>>, vector<1x64x64xbf16>
    %103 = vector.shape_cast %102 : vector<1x64x64xbf16> to vector<64x64xbf16>
    %104 = arith.truncf %101 : vector<16x64xf32> to vector<16x64xbf16>
    %cst_61 = arith.constant dense<0.000000e+00> : vector<16x64xf32>
    %105 = tpu.matmul %104, %103, %cst_61 {dimension_numbers = #tpu.dot_dimension_numbers<[1], [0], [0], [1], [0, 0, 1, 1], [], []>} : vector<16x64xbf16>, vector<64x64xbf16>, vector<16x64xf32> -> vector<16x64xf32>
    %106 = arith.addf %95, %105 : vector<16x64xf32>
    %c15_i32_62 = arith.constant 15 : i32
    %107 = tpu.dynamic_rotate %91 by %c15_i32_62 dim 0 : vector<16x64xf32>, i32 -> vector<16x64xf32>
    %108 = tpu.iota {dimensions = array<i32: 0>} : vector<16x64xi32>
    %c15_i32_63 = arith.constant 15 : i32
    %109 = vector.broadcast %c15_i32_63 : i32 to vector<16x64xi32>
    %110 = arith.cmpi slt, %108, %109 : vector<16x64xi32>
    %cst_64 = arith.constant 0.000000e+00 : f32
    %111 = vector.broadcast %cst_64 : f32 to vector<16x64xf32>
    %112 = arith.select %110, %107, %111 : vector<16x64xi1>, vector<16x64xf32>
    %c2_65 = arith.constant 2 : index
    %c0_66 = arith.constant 0 : index
    %c0_67 = arith.constant 0 : index
    %113 = vector.load %arg8[%c2_65, %c0_66, %c0_67] : memref<3x64x64xbf16, #tpu.memory_space<vmem>>, vector<1x64x64xbf16>
    %114 = vector.shape_cast %113 : vector<1x64x64xbf16> to vector<64x64xbf16>
    %115 = arith.truncf %112 : vector<16x64xf32> to vector<16x64xbf16>
    %cst_68 = arith.constant dense<0.000000e+00> : vector<16x64xf32>
    %116 = tpu.matmul %115, %114, %cst_68 {dimension_numbers = #tpu.dot_dimension_numbers<[1], [0], [0], [1], [0, 0, 1, 1], [], []>} : vector<16x64xbf16>, vector<64x64xbf16>, vector<16x64xf32> -> vector<16x64xf32>
    %117 = arith.addf %106, %116 : vector<16x64xf32>
    %c0_69 = arith.constant 0 : index
    %c0_70 = arith.constant 0 : index
    %118 = vector.load %arg9[%c0_69, %c0_70] : memref<1x64xf32, #tpu.memory_space<vmem>>, vector<1x64xf32>
    %119 = vector.broadcast %118 : vector<1x64xf32> to vector<16x64xf32>
    %120 = arith.addf %117, %119 : vector<16x64xf32>
    %cst_71 = arith.constant 0.000000e+00 : f32
    %121 = vector.broadcast %cst_71 : f32 to vector<16x64xf32>
    %122 = arith.cmpf oge, %120, %121 : vector<16x64xf32>
    %cst_72 = arith.constant 2.000000e-01 : f32
    %123 = vector.broadcast %cst_72 : f32 to vector<16x64xf32>
    %124 = arith.mulf %123, %120 : vector<16x64xf32>
    %125 = arith.select %122, %120, %124 : vector<16x64xi1>, vector<16x64xf32>
    %c0_73 = arith.constant 0 : index
    %c0_74 = arith.constant 0 : index
    %126 = vector.load %arg10[%c0_73, %c0_74] : memref<64x2xbf16, #tpu.memory_space<vmem>>, vector<64x2xbf16>
    %127 = arith.truncf %125 : vector<16x64xf32> to vector<16x64xbf16>
    %cst_75 = arith.constant dense<0.000000e+00> : vector<16x2xf32>
    %128 = tpu.matmul %127, %126, %cst_75 {dimension_numbers = #tpu.dot_dimension_numbers<[1], [0], [0], [1], [0, 0, 1, 1], [], []>} : vector<16x64xbf16>, vector<64x2xbf16>, vector<16x2xf32> -> vector<16x2xf32>
    %c0_76 = arith.constant 0 : index
    %c0_77 = arith.constant 0 : index
    %129 = vector.load %arg11[%c0_76, %c0_77] : memref<1x2xf32, #tpu.memory_space<vmem>>, vector<1x2xf32>
    %130 = vector.broadcast %129 : vector<1x2xf32> to vector<16x2xf32>
    %131 = arith.addf %128, %130 : vector<16x2xf32>
    %132 = arith.negf %131 : vector<16x2xf32>
    %133 = math.exp %132 : vector<16x2xf32>
    %cst_78 = arith.constant 1.000000e+00 : f32
    %134 = vector.broadcast %cst_78 : f32 to vector<16x2xf32>
    %135 = arith.addf %134, %133 : vector<16x2xf32>
    %136 = arith.divf %134, %135 : vector<16x2xf32>
    %137 = vector.extract_strided_slice %136 {offsets = [0, 0], sizes = [16, 1], strides = [1, 1]} : vector<16x2xf32> to vector<16x1xf32>
    %138 = vector.extract_strided_slice %136 {offsets = [0, 1], sizes = [16, 1], strides = [1, 1]} : vector<16x2xf32> to vector<16x1xf32>
    %c0_79 = arith.constant 0 : index
    %c0_80 = arith.constant 0 : index
    %139 = vector.load %arg12[%c0_79, %c0_80] : memref<128x128xbf16, #tpu.memory_space<vmem>>, vector<128x128xbf16>
    %140 = arith.truncf %57 : vector<16x128xf32> to vector<16x128xbf16>
    %cst_81 = arith.constant dense<0.000000e+00> : vector<16x128xf32>
    %141 = tpu.matmul %140, %139, %cst_81 {dimension_numbers = #tpu.dot_dimension_numbers<[1], [0], [0], [1], [0, 0, 1, 1], [], []>} : vector<16x128xbf16>, vector<128x128xbf16>, vector<16x128xf32> -> vector<16x128xf32>
    %c0_82 = arith.constant 0 : index
    %c0_83 = arith.constant 0 : index
    %142 = vector.load %arg13[%c0_82, %c0_83] : memref<1x128xf32, #tpu.memory_space<vmem>>, vector<1x128xf32>
    %143 = vector.broadcast %142 : vector<1x128xf32> to vector<16x128xf32>
    %144 = arith.addf %141, %143 : vector<16x128xf32>
    %cst_84 = arith.constant 0.000000e+00 : f32
    %145 = vector.broadcast %cst_84 : f32 to vector<16x128xf32>
    %146 = arith.cmpf oge, %144, %145 : vector<16x128xf32>
    %cst_85 = arith.constant 2.000000e-01 : f32
    %147 = vector.broadcast %cst_85 : f32 to vector<16x128xf32>
    %148 = arith.mulf %147, %144 : vector<16x128xf32>
    %149 = arith.select %146, %144, %148 : vector<16x128xi1>, vector<16x128xf32>
    %c0_86 = arith.constant 0 : index
    %c0_87 = arith.constant 0 : index
    %c0_88 = arith.constant 0 : index
    %150 = vector.load %arg18[%c0_86, %c0_87, %c0_88] : memref<1x16x128xf32, #tpu.memory_space<vmem>>, vector<1x16x128xf32>
    %151 = vector.shape_cast %150 : vector<1x16x128xf32> to vector<16x128xf32>
    %152 = vector.shape_cast %149 : vector<16x128xf32> to vector<1x16x128xf32>
    tpu.vector_store %arg18[%c0_86, %c0_87, %c0_88], %152 {strides = array<i32>} : memref<1x16x128xf32, #tpu.memory_space<vmem>>, vector<1x16x128xf32>,
    %c1_89 = arith.constant 1 : index
    %c0_90 = arith.constant 0 : index
    %c0_91 = arith.constant 0 : index
    %153 = vector.load %arg14[%c1_89, %c0_90, %c0_91] : memref<3x128x128xbf16, #tpu.memory_space<vmem>>, vector<1x128x128xbf16>
    %154 = vector.shape_cast %153 : vector<1x128x128xbf16> to vector<128x128xbf16>
    %155 = arith.truncf %149 : vector<16x128xf32> to vector<16x128xbf16>
    %cst_92 = arith.constant dense<0.000000e+00> : vector<16x128xf32>
    %156 = tpu.matmul %155, %154, %cst_92 {dimension_numbers = #tpu.dot_dimension_numbers<[1], [0], [0], [1], [0, 0, 1, 1], [], []>} : vector<16x128xbf16>, vector<128x128xbf16>, vector<16x128xf32> -> vector<16x128xf32>
    %c1_i32_93 = arith.constant 1 : i32
    %157 = tpu.dynamic_rotate %149 by %c1_i32_93 dim 0 : vector<16x128xf32>, i32 -> vector<16x128xf32>
    %158 = tpu.iota {dimensions = array<i32: 0>} : vector<16x128xi32>
    %c1_i32_94 = arith.constant 1 : i32
    %159 = vector.broadcast %c1_i32_94 : i32 to vector<16x128xi32>
    %160 = arith.cmpi sge, %158, %159 : vector<16x128xi32>
    %cst_95 = arith.constant 0.000000e+00 : f32
    %161 = vector.broadcast %cst_95 : f32 to vector<16x128xf32>
    %162 = arith.select %160, %157, %161 : vector<16x128xi1>, vector<16x128xf32>
    %c0_96 = arith.constant 0 : index
    %c0_97 = arith.constant 0 : index
    %c0_98 = arith.constant 0 : index
    %163 = vector.load %arg14[%c0_96, %c0_97, %c0_98] : memref<3x128x128xbf16, #tpu.memory_space<vmem>>, vector<1x128x128xbf16>
    %164 = vector.shape_cast %163 : vector<1x128x128xbf16> to vector<128x128xbf16>
    %165 = arith.truncf %162 : vector<16x128xf32> to vector<16x128xbf16>
    %cst_99 = arith.constant dense<0.000000e+00> : vector<16x128xf32>
    %166 = tpu.matmul %165, %164, %cst_99 {dimension_numbers = #tpu.dot_dimension_numbers<[1], [0], [0], [1], [0, 0, 1, 1], [], []>} : vector<16x128xbf16>, vector<128x128xbf16>, vector<16x128xf32> -> vector<16x128xf32>
    %167 = arith.addf %156, %166 : vector<16x128xf32>
    %c15_i32_100 = arith.constant 15 : i32
    %168 = tpu.dynamic_rotate %149 by %c15_i32_100 dim 0 : vector<16x128xf32>, i32 -> vector<16x128xf32>
    %169 = tpu.iota {dimensions = array<i32: 0>} : vector<16x128xi32>
    %c15_i32_101 = arith.constant 15 : i32
    %170 = vector.broadcast %c15_i32_101 : i32 to vector<16x128xi32>
    %171 = arith.cmpi slt, %169, %170 : vector<16x128xi32>
    %cst_102 = arith.constant 0.000000e+00 : f32
    %172 = vector.broadcast %cst_102 : f32 to vector<16x128xf32>
    %173 = arith.select %171, %168, %172 : vector<16x128xi1>, vector<16x128xf32>
    %c2_103 = arith.constant 2 : index
    %c0_104 = arith.constant 0 : index
    %c0_105 = arith.constant 0 : index
    %174 = vector.load %arg14[%c2_103, %c0_104, %c0_105] : memref<3x128x128xbf16, #tpu.memory_space<vmem>>, vector<1x128x128xbf16>
    %175 = vector.shape_cast %174 : vector<1x128x128xbf16> to vector<128x128xbf16>
    %176 = arith.truncf %173 : vector<16x128xf32> to vector<16x128xbf16>
    %cst_106 = arith.constant dense<0.000000e+00> : vector<16x128xf32>
    %177 = tpu.matmul %176, %175, %cst_106 {dimension_numbers = #tpu.dot_dimension_numbers<[1], [0], [0], [1], [0, 0, 1, 1], [], []>} : vector<16x128xbf16>, vector<128x128xbf16>, vector<16x128xf32> -> vector<16x128xf32>
    %178 = arith.addf %167, %177 : vector<16x128xf32>
    %c0_107 = arith.constant 0 : index
    %c0_108 = arith.constant 0 : index
    %179 = vector.load %arg15[%c0_107, %c0_108] : memref<1x128xf32, #tpu.memory_space<vmem>>, vector<1x128xf32>
    %180 = vector.broadcast %179 : vector<1x128xf32> to vector<16x128xf32>
    %181 = arith.addf %178, %180 : vector<16x128xf32>
    %cst_109 = arith.constant 0.000000e+00 : f32
    %182 = vector.broadcast %cst_109 : f32 to vector<16x128xf32>
    %183 = arith.cmpf oge, %181, %182 : vector<16x128xf32>
    %cst_110 = arith.constant 2.000000e-01 : f32
    %184 = vector.broadcast %cst_110 : f32 to vector<16x128xf32>
    %185 = arith.mulf %184, %181 : vector<16x128xf32>
    %186 = arith.select %183, %181, %185 : vector<16x128xi1>, vector<16x128xf32>
    %c0_111 = arith.constant 0 : index
    %c0_112 = arith.constant 0 : index
    %187 = vector.load %arg16[%c0_111, %c0_112] : memref<128x128xbf16, #tpu.memory_space<vmem>>, vector<128x128xbf16>
    %188 = arith.truncf %186 : vector<16x128xf32> to vector<16x128xbf16>
    %cst_113 = arith.constant dense<0.000000e+00> : vector<16x128xf32>
    %189 = tpu.matmul %188, %187, %cst_113 {dimension_numbers = #tpu.dot_dimension_numbers<[1], [0], [0], [1], [0, 0, 1, 1], [], []>} : vector<16x128xbf16>, vector<128x128xbf16>, vector<16x128xf32> -> vector<16x128xf32>
    %c0_114 = arith.constant 0 : index
    %c0_115 = arith.constant 0 : index
    %190 = vector.load %arg17[%c0_114, %c0_115] : memref<1x128xf32, #tpu.memory_space<vmem>>, vector<1x128xf32>
    %191 = vector.broadcast %190 : vector<1x128xf32> to vector<16x128xf32>
    %192 = arith.addf %189, %191 : vector<16x128xf32>
    %193 = tpu.iota {dimensions = array<i32: 1>} : vector<16x128xi32>
    %c9_i32 = arith.constant 9 : i32
    %194 = vector.broadcast %c9_i32 : i32 to vector<16x128xi32>
    %195 = arith.cmpi eq, %193, %194 : vector<16x128xi32>
    %196 = arith.addf %137, %138 : vector<16x1xf32>
    %cst_116 = arith.constant 5.000000e-01 : f32
    %197 = vector.broadcast %cst_116 : f32 to vector<16x1xf32>
    %198 = arith.mulf %197, %196 : vector<16x1xf32>
    %199 = vector.shape_cast %198 : vector<16x1xf32> to vector<16x1xf32>
    %200 = vector.broadcast %199 : vector<16x1xf32> to vector<16x128xf32>
    %201 = arith.select %195, %200, %192 : vector<16x128xi1>, vector<16x128xf32>
    %c10_i32 = arith.constant 10 : i32
    %202 = vector.broadcast %c10_i32 : i32 to vector<16x128xi32>
    %203 = arith.cmpi eq, %193, %202 : vector<16x128xi32>
    %204 = vector.shape_cast %137 : vector<16x1xf32> to vector<16x1xf32>
    %205 = vector.broadcast %204 : vector<16x1xf32> to vector<16x128xf32>
    %206 = arith.select %203, %205, %201 : vector<16x128xi1>, vector<16x128xf32>
    %c11_i32 = arith.constant 11 : i32
    %207 = vector.broadcast %c11_i32 : i32 to vector<16x128xi32>
    %208 = arith.cmpi eq, %193, %207 : vector<16x128xi32>
    %209 = vector.shape_cast %138 : vector<16x1xf32> to vector<16x1xf32>
    %210 = vector.broadcast %209 : vector<16x1xf32> to vector<16x128xf32>
    %211 = arith.select %208, %210, %206 : vector<16x128xi1>, vector<16x128xf32>
    %c1_i32_117 = arith.constant 1 : i32
    %212 = tpu.dynamic_rotate %211 by %c1_i32_117 dim 0 : vector<16x128xf32>, i32 -> vector<16x128xf32>
    %213 = tpu.iota {dimensions = array<i32: 0>} : vector<16x128xi32>
    %c1_i32_118 = arith.constant 1 : i32
    %214 = vector.broadcast %c1_i32_118 : i32 to vector<16x128xi32>
    %215 = arith.cmpi sge, %213, %214 : vector<16x128xi32>
    %cst_119 = arith.constant 0.000000e+00 : f32
    %216 = vector.broadcast %cst_119 : f32 to vector<16x128xf32>
    %217 = arith.select %215, %212, %216 : vector<16x128xi1>, vector<16x128xf32>
    %218 = arith.addf %211, %217 : vector<16x128xf32>
    %c15_i32_120 = arith.constant 15 : i32
    %219 = tpu.dynamic_rotate %211 by %c15_i32_120 dim 0 : vector<16x128xf32>, i32 -> vector<16x128xf32>
    %220 = tpu.iota {dimensions = array<i32: 0>} : vector<16x128xi32>
    %c15_i32_121 = arith.constant 15 : i32
    %221 = vector.broadcast %c15_i32_121 : i32 to vector<16x128xi32>
    %222 = arith.cmpi slt, %220, %221 : vector<16x128xi32>
    %cst_122 = arith.constant 0.000000e+00 : f32
    %223 = vector.broadcast %cst_122 : f32 to vector<16x128xf32>
    %224 = arith.select %222, %219, %223 : vector<16x128xi1>, vector<16x128xf32>
    %225 = arith.addf %218, %224 : vector<16x128xf32>
    %c2_i32 = arith.constant 2 : i32
    %226 = tpu.dynamic_rotate %211 by %c2_i32 dim 0 : vector<16x128xf32>, i32 -> vector<16x128xf32>
    %227 = tpu.iota {dimensions = array<i32: 0>} : vector<16x128xi32>
    %c2_i32_123 = arith.constant 2 : i32
    %228 = vector.broadcast %c2_i32_123 : i32 to vector<16x128xi32>
    %229 = arith.cmpi sge, %227, %228 : vector<16x128xi32>
    %cst_124 = arith.constant 0.000000e+00 : f32
    %230 = vector.broadcast %cst_124 : f32 to vector<16x128xf32>
    %231 = arith.select %229, %226, %230 : vector<16x128xi1>, vector<16x128xf32>
    %232 = arith.addf %225, %231 : vector<16x128xf32>
    %c14_i32 = arith.constant 14 : i32
    %233 = tpu.dynamic_rotate %211 by %c14_i32 dim 0 : vector<16x128xf32>, i32 -> vector<16x128xf32>
    %234 = tpu.iota {dimensions = array<i32: 0>} : vector<16x128xi32>
    %c14_i32_125 = arith.constant 14 : i32
    %235 = vector.broadcast %c14_i32_125 : i32 to vector<16x128xi32>
    %236 = arith.cmpi slt, %234, %235 : vector<16x128xi32>
    %cst_126 = arith.constant 0.000000e+00 : f32
    %237 = vector.broadcast %cst_126 : f32 to vector<16x128xf32>
    %238 = arith.select %236, %233, %237 : vector<16x128xi1>, vector<16x128xf32>
    %239 = arith.addf %232, %238 : vector<16x128xf32>
    %cst_127 = arith.constant 2.000000e-01 : f32
    %240 = vector.broadcast %cst_127 : f32 to vector<16x128xf32>
    %241 = arith.mulf %239, %240 : vector<16x128xf32>
    %c0_128 = arith.constant 0 : index
    %c0_129 = arith.constant 0 : index
    %c0_130 = arith.constant 0 : index
    %242 = vector.load %arg19[%c0_128, %c0_129, %c0_130] : memref<1x16x128xf32, #tpu.memory_space<vmem>>, vector<1x16x128xf32>
    %243 = vector.shape_cast %242 : vector<1x16x128xf32> to vector<16x128xf32>
    %244 = vector.shape_cast %241 : vector<16x128xf32> to vector<1x16x128xf32>
    tpu.vector_store %arg19[%c0_128, %c0_129, %c0_130], %244 {strides = array<i32>} : memref<1x16x128xf32, #tpu.memory_space<vmem>>, vector<1x16x128xf32>,
    return
  }
  func.func @transform_0(%arg0: i32) -> (i32, i32, i32) {
    %c0_i32 = arith.constant 0 : i32
    %c0_i32_0 = arith.constant 0 : i32
    %c0_i32_1 = arith.constant 0 : i32
    return %arg0, %c0_i32, %c0_i32_0 : i32, i32, i32
  }
  func.func @transform_1(%arg0: i32) -> (i32, i32) {
    %c0_i32 = arith.constant 0 : i32
    %c0_i32_0 = arith.constant 0 : i32
    %c0_i32_1 = arith.constant 0 : i32
    return %c0_i32, %c0_i32_0 : i32, i32
  }
  func.func @transform_2(%arg0: i32) -> (i32, i32) {
    %c0_i32 = arith.constant 0 : i32
    %c0_i32_0 = arith.constant 0 : i32
    %c0_i32_1 = arith.constant 0 : i32
    return %c0_i32, %c0_i32_0 : i32, i32
  }
  func.func @transform_3(%arg0: i32) -> (i32, i32, i32) {
    %c0_i32 = arith.constant 0 : i32
    %c0_i32_0 = arith.constant 0 : i32
    %c0_i32_1 = arith.constant 0 : i32
    %c0_i32_2 = arith.constant 0 : i32
    return %c0_i32, %c0_i32_0, %c0_i32_1 : i32, i32, i32
  }
  func.func @transform_4(%arg0: i32) -> (i32, i32) {
    %c0_i32 = arith.constant 0 : i32
    %c0_i32_0 = arith.constant 0 : i32
    %c0_i32_1 = arith.constant 0 : i32
    return %c0_i32, %c0_i32_0 : i32, i32
  }
  func.func @transform_5(%arg0: i32) -> (i32, i32, i32) {
    %c0_i32 = arith.constant 0 : i32
    %c0_i32_0 = arith.constant 0 : i32
    %c0_i32_1 = arith.constant 0 : i32
    %c0_i32_2 = arith.constant 0 : i32
    return %c0_i32, %c0_i32_0, %c0_i32_1 : i32, i32, i32
  }
  func.func @transform_6(%arg0: i32) -> (i32, i32) {
    %c0_i32 = arith.constant 0 : i32
    %c0_i32_0 = arith.constant 0 : i32
    %c0_i32_1 = arith.constant 0 : i32
    return %c0_i32, %c0_i32_0 : i32, i32
  }
  func.func @transform_7(%arg0: i32) -> (i32, i32, i32) {
    %c0_i32 = arith.constant 0 : i32
    %c0_i32_0 = arith.constant 0 : i32
    %c0_i32_1 = arith.constant 0 : i32
    %c0_i32_2 = arith.constant 0 : i32
    return %c0_i32, %c0_i32_0, %c0_i32_1 : i32, i32, i32
  }
  func.func @transform_8(%arg0: i32) -> (i32, i32) {
    %c0_i32 = arith.constant 0 : i32
    %c0_i32_0 = arith.constant 0 : i32
    %c0_i32_1 = arith.constant 0 : i32
    return %c0_i32, %c0_i32_0 : i32, i32
  }
  func.func @transform_9(%arg0: i32) -> (i32, i32) {
    %c0_i32 = arith.constant 0 : i32
    %c0_i32_0 = arith.constant 0 : i32
    %c0_i32_1 = arith.constant 0 : i32
    return %c0_i32, %c0_i32_0 : i32, i32
  }
  func.func @transform_10(%arg0: i32) -> (i32, i32) {
    %c0_i32 = arith.constant 0 : i32
    %c0_i32_0 = arith.constant 0 : i32
    %c0_i32_1 = arith.constant 0 : i32
    return %c0_i32, %c0_i32_0 : i32, i32
  }
  func.func @transform_11(%arg0: i32) -> (i32, i32) {
    %c0_i32 = arith.constant 0 : i32
    %c0_i32_0 = arith.constant 0 : i32
    %c0_i32_1 = arith.constant 0 : i32
    return %c0_i32, %c0_i32_0 : i32, i32
  }
  func.func @transform_12(%arg0: i32) -> (i32, i32) {
    %c0_i32 = arith.constant 0 : i32
    %c0_i32_0 = arith.constant 0 : i32
    %c0_i32_1 = arith.constant 0 : i32
    return %c0_i32, %c0_i32_0 : i32, i32
  }
  func.func @transform_13(%arg0: i32) -> (i32, i32, i32) {
    %c0_i32 = arith.constant 0 : i32
    %c0_i32_0 = arith.constant 0 : i32
    %c0_i32_1 = arith.constant 0 : i32
    %c0_i32_2 = arith.constant 0 : i32
    return %c0_i32, %c0_i32_0, %c0_i32_1 : i32, i32, i32
  }
  func.func @transform_14(%arg0: i32) -> (i32, i32) {
    %c0_i32 = arith.constant 0 : i32
    %c0_i32_0 = arith.constant 0 : i32
    %c0_i32_1 = arith.constant 0 : i32
    return %c0_i32, %c0_i32_0 : i32, i32
  }
  func.func @transform_15(%arg0: i32) -> (i32, i32) {
    %c0_i32 = arith.constant 0 : i32
    %c0_i32_0 = arith.constant 0 : i32
    %c0_i32_1 = arith.constant 0 : i32
    return %c0_i32, %c0_i32_0 : i32, i32
  }
  func.func @transform_16(%arg0: i32) -> (i32, i32) {
    %c0_i32 = arith.constant 0 : i32
    %c0_i32_0 = arith.constant 0 : i32
    %c0_i32_1 = arith.constant 0 : i32
    return %c0_i32, %c0_i32_0 : i32, i32
  }
  func.func @transform_17(%arg0: i32) -> (i32, i32, i32) {
    %c0_i32 = arith.constant 0 : i32
    %c0_i32_0 = arith.constant 0 : i32
    %c0_i32_1 = arith.constant 0 : i32
    return %arg0, %c0_i32, %c0_i32_0 : i32, i32, i32
  }
  func.func @transform_18(%arg0: i32) -> (i32, i32, i32) {
    %c0_i32 = arith.constant 0 : i32
    %c0_i32_0 = arith.constant 0 : i32
    %c0_i32_1 = arith.constant 0 : i32
    return %arg0, %c0_i32, %c0_i32_0 : i32, i32, i32
  }
}

</mosaic_0001>

<bundles_post_ra>
// kernel: delu_act_forward.1
= control target key start
LH: loop header
LB: loop body
LE: loop exit
PB: predicated region body
PF: predicated region fallthrough
CT: control target
= control target key end

     0   :  { %s4386_s0 = inlined_call_operand.vmem [shape: f32[2,16,128], index: 0, kind: input, shape index: {}]   ;;  %s4387_s1 = inlined_call_operand.vmem [shape: bf16[128,128], index: 1, kind: input, shape index: {}]   ;;  %s4388_s2 = inlined_call_operand.vmem [shape: f32[1,128], index: 2, kind: input, shape index: {}]   ;;  %s4389_s3 = inlined_call_operand.vmem [shape: bf16[3,128,128], index: 3, kind: input, shape index: {}]   ;;  %s4390_s4 = inlined_call_operand.vmem [shape: f32[1,128], index: 4, kind: input, shape index: {}]   ;;  %s4391_s5 = inlined_call_operand.vmem [shape: bf16[3,128,64], index: 5, kind: input, shape index: {}]   ;;  %s4392_s6 = inlined_call_operand.vmem [shape: f32[1,64], index: 6, kind: input, shape index: {}]   ;;  %s4393_s7 = inlined_call_operand.vmem [shape: bf16[3,64,64], index: 7, kind: input, shape index: {}]   ;;  %s4394_s8 = inlined_call_operand.vmem [shape: f32[1,64], index: 8, kind: input, shape index: {}]   ;;  %s4395_s9 = inlined_call_operand.vmem [shape: bf16[64,2], index: 9, kind: input, shape index: {}]   ;;  %s4396_s10 = inlined_call_operand.vmem [shape: f32[1,2], index: 10, kind: input, shape index: {}]   ;;  %s4397_s11 = inlined_call_operand.vmem [shape: bf16[128,128], index: 11, kind: input, shape index: {}]   ;;  %s4398_s12 = inlined_call_operand.vmem [shape: f32[1,128], index: 12, kind: input, shape index: {}]   ;;  %s4399_s13 = inlined_call_operand.vmem [shape: bf16[3,128,128], index: 13, kind: input, shape index: {}]   ;;  %s4400_s14 = inlined_call_operand.vmem [shape: f32[1,128], index: 14, kind: input, shape index: {}]   ;;  %s4401_s15 = inlined_call_operand.vmem [shape: bf16[128,128], index: 15, kind: input, shape index: {}]   ;;  %s4402_s16 = inlined_call_operand.vmem [shape: f32[1,128], index: 16, kind: input, shape index: {}]   ;;  %s4403_s17 = inlined_call_operand.hbm [shape: f32[2,16,128], index: 17, kind: output, shape index: {0}]   ;;  %s4404_s18 = inlined_call_operand.vmem [shape: f32[2,16,128], index: 18, kind: output, shape index: {1}]  }
   0x1   :  { %4412 = sst [smem:[#allocation11_spill]] %s4386_s0 }
   0x2   :  { %4413 = sst [smem:[#allocation12_spill]] %s4387_s1 }
   0x3   :  { %4414 = sst [smem:[#allocation13_spill]] %s4388_s2 }
   0x4   :  { %4415 = sst [smem:[#allocation14_spill]] %s4404_s18 }
   0x5   :  { %24 = vsyncpa [#allocation3], 0 }
   0x6   :  { %26 = vsyncpa [#allocation3 + $0x1], 0  ;;  %s3613_s27 = smov 0   ;;  %s3615_s28 = smov 0  }
   0x7   :  { %s3617_s29 = smov 0   ;;  %s3619_s30 = smov 0  }
   0x8 LB: > { %4416 = sst [smem:[#allocation5_spill]] %s3495_s27  ;;  %s3634_s0 = sadd.s32 4294967295, %s3507_s30   ;;  %s3507_s30 = sphi %s3619_s30, %s4435_s30   ;;  %s3503_s29 = sphi %s3617_s29, %s4437_s29   ;;  %s3499_s28 = sphi %s3615_s28, %s4439_s28   ;;  %s3495_s27 = sphi %s3613_s27, %s4438_s27  }
   0x9   : > { %4417 = sst [smem:[#allocation6_spill]] %s3503_s29  ;;  %s2576_s19 = sadd.s32 4294967294, %s3507_s30  }
   0xa   : > { %4418 = sst [smem:[#allocation7_spill]] %s3507_s30  ;;  %s3638_s1 = sadd.s32 1, %s3507_s30  }
   0xb   : > { %4419 = sst [smem:[#allocation8_spill]] %s3638_s1  ;;  %s401_s20 = sadd.s32 1, %s3503_s29 }
   0xc   : > { %s398_s21 = ssub.s32 %s3507_s30, %s3638_s1  ;;  %p411_p0 = scmp.ne.s32.totalorder %s3503_s29, %s3499_s28 }
   0xd   : > { %p399_p1 = scmp.eq.s32.totalorder %s398_s21, 0  ;;  %p412_p2 = scmp.eq.s32.totalorder %s3634_s0, 1 }
   0xe   : > { %p417_p3 = scmp.ne.s32.totalorder %s3499_s28, %s3495_s27  ;;  %p418_p4 = scmp.eq.s32.totalorder %s2576_s19, 1 }
   0xf   : > { %s3649_s22 = scalar_select %p399_p1, %s3503_s29, %s401_s20  }
  0x10   : > { %p3651_p5 = por %p412_p2, %p411_p0  ;;  %p3655_p6 = por %p418_p4, %p417_p3 }
  0x11   : > { %4420 = sst [smem:[#allocation9_spill]] %s3649_s22  ;;  %p2579_p7 = scmp.ge.s32.totalorder %s3507_s30, 1 }
  0x12   : > { %s4422_s23 = scalar_select %p3655_p6, 1, 0 }
  0x13   : > { %p518_p8 = scmp.lt.s32.totalorder %s3507_s30, 3 }
  0x14   : > { %4423 = sst [smem:[#allocation10_spill]] %s4422_s23 }
  0x15   : > { %p519_p9 = pnand %p2579_p7, %p518_p8 }
  0x16   : > { %s4424_s26 = sld [smem:[#allocation12_spill]] (!%p519_p9)  ;;  %v3509_v1 = vmov (!%p519_p9), 0.0   ;;  %v3318_v2 = vld [vmem:[%s4389_s3] sm:$0xff] (!%p519_p9)   ;;  %vm3510_vm0 = vmmov (!%p519_p9), 0   ;;  %p577_p10 = scmp.lt.s32.totalorder (!%p519_p9), %s3634_s0, 1  ;;  %v3320_v4 = vld [vmem:[%s4389_s3 + $0x8] sm:$0xff] (!%p519_p9)   ;;  %v728_v13 = vlaneseq (!%p519_p9) }
  0x17   : > { %522 = sbr.rel (%p519_p9) target bundleno = 1385 (0x569), region = 88  ;;  %2978 = vmatprep.subr.bf16.mxu0 (!%p519_p9), %v3509_v1  ;;  %2998 = vmatprep.subr.bf16.mxu1 (!%p519_p9), %v3509_v1  ;;  %v3322_v6 = vld [vmem:[%s4389_s3 + $0x10] sm:$0xff] (!%p519_p9)   ;;  %v3324_v8 = vld [vmem:[%s4389_s3 + $0x18] sm:$0xff] (!%p519_p9)   ;;  %s4425_s23 = sld [smem:[#allocation11_spill]] (!%p519_p9)  ;;  %v3326_v10 = vld [vmem:[%s4389_s3 + $0x20] sm:$0xff] (!%p519_p9)   ;;  %vm3511_vm3 = vmmov (!%p519_p9), 1  }
  0x18   : > { %2994 = vmatprep.mubr.msk.bf16.mxu0 (!%p519_p9), %vm3510_vm0, %v3509_v1  ;;  %2999 = vmatpush3.bf16.msra.mxu1 (!%p519_p9), %v3318_v2  ;;  %v3328_v16 = vld [vmem:[%s4389_s3 + $0x28] sm:$0xff] (!%p519_p9)   ;;  %v3730_v18 = vshrl.u32 (!%p519_p9), %v728_v13, 7  ;;  %v3330_v21 = vld [vmem:[%s4389_s3 + $0x30] sm:$0xff] (!%p519_p9)   ;;  %v3332_v27 = vld [vmem:[%s4389_s3 + $0x38] sm:$0xff] (!%p519_p9)   ;;  %s4430_s29 = sld [smem:[#allocation13_spill]] (!%p519_p9)  ;;  %vm1484_vm13 = vcmask (!%p519_p9), 523264  }
  0x19   : > { %3000 = vmatprep.subr.bf16.mxu1 (!%p519_p9), %v3509_v1  ;;  %3014 = vmatprep.mubr.msk.bf16.mxu1 (!%p519_p9), %vm3510_vm0, %v3509_v1  ;;  %v3334_v35 = vld [vmem:[%s4389_s3 + $0x80] sm:$0xff] (!%p519_p9)   ;;  %v3336_v39 = vld [vmem:[%s4389_s3 + $0x88] sm:$0xff] (!%p519_p9)   ;;  %v3338_v43 = vld [vmem:[%s4389_s3 + $0x90] sm:$0xff] (!%p519_p9)   ;;  %s567_s25 = sand.u32 (!%p519_p9), 1, %s3499_s28   ;;  %s3513_s19 = smov (!%p519_p9), 127  }
  0x1a   : > { %vm730_vm1 = vcmp.lt.s32.totalorder (!%p519_p9), %v3730_v18, 1  ;;  %vm734_vm2 = vcmp.ge.s32.totalorder (!%p519_p9), %v3730_v18, 1  ;;  %v3333_v36 = vld [vmem:[%s4389_s3 + $0x40] sm:$0xff] (!%p519_p9)   ;;  %v3772_v38 = vadd.s32 (!%p519_p9), 8, %v3730_v18  ;;  %v3335_v42 = vld [vmem:[%s4389_s3 + $0x48] sm:$0xff] (!%p519_p9)   ;;  %v3337_v44 = vld [vmem:[%s4389_s3 + $0x50] sm:$0xff] (!%p519_p9)  }
  0x1b   : > { %vm3759_vm4 = vmpackc.low (!%p519_p9), %vm3511_vm3, %vm734_vm2  ;;  %v3340_v45 = vld [vmem:[%s4389_s3 + $0x98] sm:$0xff] (!%p519_p9)   ;;  %v3342_v47 = vld [vmem:[%s4389_s3 + $0xa0] sm:$0xff] (!%p519_p9)   ;;  %vm935_vm6 = vcmp.lt.s32.totalorder (!%p519_p9), %v3730_v18, 7  ;;  %s2580_s1 = sshll.u32 (!%p519_p9), %s567_s25, 4  ;;  %s2849_s18 = sshll.u32 (!%p519_p9), %s3634_s0, 8 }
  0x1c   : > { %v3317_v0 = vld [vmem:[%s4424_s26] sm:$0xff] (!%p519_p9)   ;;  %v3319_v3 = vld [vmem:[%s4424_s26 + $0x8] sm:$0xff] (!%p519_p9)   ;;  %v3321_v5 = vld [vmem:[%s4424_s26 + $0x10] sm:$0xff] (!%p519_p9)   ;;  %3001 = vmatpush3.bf16.msra.mxu1 (!%p519_p9), %v3320_v4  ;;  %vm939_vm5 = vcmp.lt.s32.totalorder (!%p519_p9), %v3772_v38, 15  ;;  %s4126_s24 = scalar_lea.vmem (!%p519_p9), [#allocation2], %s2580_s1 }
  0x1d   : > { %2979 = vmatpush3.bf16.msra.mxu0 (!%p519_p9), %v3317_v0  ;;  %3002 = vmatprep.subr.bf16.mxu1 (!%p519_p9), %v3509_v1  ;;  %v3323_v7 = vld [vmem:[%s4424_s26 + $0x18] sm:$0xff] (!%p519_p9)   ;;  %v3325_v9 = vld [vmem:[%s4424_s26 + $0x20] sm:$0xff] (!%p519_p9)   ;;  %v3327_v15 = vld [vmem:[%s4424_s26 + $0x28] sm:$0xff] (!%p519_p9)  }
  0x1e   : > { %2980 = vmatprep.subr.bf16.mxu0 %v3509_v1  ;;  %s3686_s20 = scalar_select %p577_p10, %s3634_s0, 1  ;;  %v3329_v19 = vld [vmem:[%s4424_s26 + $0x30] sm:$0xff]   ;;  %v3331_v26 = vld [vmem:[%s4424_s26 + $0x38] sm:$0xff]   ;;  %v3341_v48 = vld [vmem:[%s4389_s3 + $0x60] sm:$0xff]  }
  0x1f   : > { %v3339_v46 = vld [vmem:[%s4389_s3 + $0x58] sm:$0xff]   ;;  %v3344_v49 = vld [vmem:[%s4389_s3 + $0xa8] sm:$0xff]   ;;  %v3346_v51 = vld [vmem:[%s4389_s3 + $0xb0] sm:$0xff]   ;;  %s3515_s0 = smov [#allocation2]  }
  0x20   : > { %s2847_s22 = sshll.u32 %s3686_s20, 4  ;;  %3003 = vmatpush3.bf16.msra.mxu1 %v3322_v6  ;;  %v3343_v50 = vld [vmem:[%s4389_s3 + $0x68] sm:$0xff]   ;;  %v3345_v52 = vld [vmem:[%s4389_s3 + $0x70] sm:$0xff]   ;;  %vm3833_vm7 = vmpackc.low %vm939_vm5, %vm3511_vm3 }
  0x21   : > { %2981 = vmatpush3.bf16.msra.mxu0 %v3319_v3  ;;  %3004 = vmatprep.subr.bf16.mxu1 %v3509_v1  ;;  %s581_s27 = scalar_lea.vmem %s4425_s23, %s2847_s22  ;;  %v3348_v54 = vld [vmem:[%s4389_s3 + $0xb8] sm:$0xff]   ;;  %v3349_v60 = vld [vmem:[%s4391_s5 + $0x40] sm:$0xff]   ;;  %v3351_v62 = vld [vmem:[%s4391_s5 + $0x48] sm:$0xff]   ;;  %s4305_s23 = scalar_lea.hbm %s4403_s17, %s2849_s18 }
  0x22   : > { %2982 = vmatprep.subr.bf16.mxu0 %v3509_v1  ;;  %v3715_v11 = vld [vmem:[%s581_s27] sm:$0xff]  ;;  %v3717_v12 = vld [vmem:[%s581_s27 + $0x8] sm:$0xff]  ;;  %v3347_v55 = vld [vmem:[%s4389_s3 + $0x78] sm:$0xff]   ;;  %s2486_s27 = sshll.u32 %s4126_s24, 4  ;;  %s4308_s27 = int_to_ptr.vmem [resolvable:$true] %s2486_s27 }
  0x23   : > { %v590_v14 = vadd.f32 %v3717_v12, %v3715_v11  ;;  %v726_v22 = vrot.slane %v3715_v11, 7  ;;  %v727_v24 = vrot.slane %v3717_v12, 7  ;;  %v933_v40 = vrot.slane %v3715_v11, 1  ;;  %v3350_v61 = vld [vmem:[%s4391_s5] sm:$0xff]   ;;  %v3352_v63 = vld [vmem:[%s4391_s5 + $0x8] sm:$0xff]   ;;  %v3353_v0 = vld [vmem:[%s4391_s5 + $0x50] sm:$0xff]  }
  0x24   : > { %3005 = vmatpush3.bf16.msra.mxu1 %v3324_v8  ;;  %v934_v41 = vrot.slane %v3717_v12, 1  ;;  %v725_v59 = vpack.c.bf16 %v3717_v12, %v3715_v11  ;;  %v3354_v2 = vld [vmem:[%s4391_s5 + $0x10] sm:$0xff]   ;;  %v3355_v3 = vld [vmem:[%s4391_s5 + $0x58] sm:$0xff]   ;;  %v3358_v6 = vld [vmem:[%s4391_s5 + $0x20] sm:$0xff]   ;;  %s3445_s21 = scalar_lea.vmem %s4308_s27, 256 }
  0x25   : > { %2983 = vmatpush3.bf16.msra.mxu0 %v3321_v5  ;;  %3006 = vmatprep.subr.bf16.mxu1 %v3509_v1  ;;  %v591_v17 = vrot.slane %v590_v14, 4  ;;  %v731_v29 = vsel %vm730_vm1, %v726_v22, %v727_v24  ;;  %v732_v30 = vsel %vm730_vm1, %v727_v24, %v726_v22  ;;  %v3356_v4 = vld [vmem:[%s4391_s5 + $0x18] sm:$0xff]   ;;  %v3357_v5 = vld [vmem:[%s4391_s5 + $0x60] sm:$0xff]   ;;  %v3360_v8 = vld [vmem:[%s4391_s5 + $0x28] sm:$0xff]   ;;  %p3446_p11 = scmp.ne.s32.totalorder %s4308_s27, %s3445_s21 }
  0x26   : > { %2984 = vmatprep.subr.bf16.mxu0 %v3509_v1  ;;  %v2618_v33 = vpack.c.bf16 %v731_v29, %v732_v30  ;;  %v936_v56 = vsel %vm935_vm6, %v933_v40, %v934_v41  ;;  %v937_v57 = vsel %vm935_vm6, %v934_v41, %v933_v40  ;;  %v3416_v32 = vld [vmem:[%s4399_s13 + $0x98] sm:$0xff]   ;;  %v3423_v53 = vld [vmem:[%s4401_s15 + $0x10] sm:$0xff]  }
  0x27   : > { %v592_v20 = vadd.f32 %v591_v17, %v590_v14  ;;  %v2653_v58 = vpack.c.bf16 %v937_v57, %v936_v56  ;;  %v3363_v14 = vld [vmem:[%s4391_s5 + $0x78] sm:$0xff]   ;;  %p3447_p12 = pnand %p3446_p11, %p3651_p5 }
  0x28   : > { %3007 = vmatpush3.bf16.msra.mxu1 %v3326_v10  ;;  %v3362_v10 = vld [vmem:[%s4391_s5 + $0x30] sm:$0xff]  }
  0x29   : > { %2985 = vmatpush3.bf16.msra.mxu0 %v3323_v7  ;;  %3008 = vmatprep.subr.bf16.mxu1 %v3509_v1  ;;  %v593_v23 = vrot.slane %v592_v20, 2  ;;  %v3359_v7 = vld [vmem:[%s4391_s5 + $0x68] sm:$0xff]   ;;  %p3448_p13 = pneg %p3447_p12 }
  0x2a   : > { %2986 = vmatprep.subr.bf16.mxu0 %v3509_v1 }
  0x2b   : > { %v594_v25 = vadd.f32 %v593_v23, %v592_v20 }
  0x2c   : > { %3009 = vmatpush3.bf16.msra.mxu1 %v3328_v16 }
  0x2d   : > { %2987 = vmatpush3.bf16.msra.mxu0 %v3325_v9  ;;  %3010 = vmatprep.subr.bf16.mxu1 %v3509_v1  ;;  %v595_v28 = vrot.slane %v594_v25, 1  ;;  %v3361_v9 = vld [vmem:[%s4391_s5 + $0x70] sm:$0xff]  }
  0x2e   : > { %2988 = vmatprep.subr.bf16.mxu0 %v3509_v1 }
  0x2f   : > { %v596_v31 = vadd.f32 %v595_v28, %v594_v25  ;;  %v616_v25 = vld [vmem:[%s4430_s29] sm:$0x1]  ;;  %s3449_s29 = sshll.u32 %s3515_s0, 4  ;;  %s3450_s29 = int_to_ptr.vmem [resolvable:$false] %s3449_s29 }
  0x30   : > { %3011 = vmatpush3.bf16.msra.mxu1 %v3330_v21  ;;  %s3451_s30 = scalar_lea.vmem %s3450_s29, 512  ;;  %p3452_p0 = scmp.lt.s32.totalorder %s4308_s27, %s3450_s29 }
  0x31   : > { %2989 = vmatpush3.bf16.msra.mxu0 %v3327_v15  ;;  %3012 = vmatprep.subr.bf16.mxu1 %v3509_v1  ;;  %v598_v34 = vmul.f32 0.0625, %v596_v31  ;;  %v3364_v15 = vld [vmem:[%s4391_s5 + $0x38] sm:$0xff]   ;;  %p3453_p1 = scmp.lt.s32.totalorder %s3451_s30, %s3445_s21 }
  0x32   : > { %2990 = vmatprep.subr.bf16.mxu0 %v3509_v1 }
  0x33   : > { %v615_v37 = vpack.c.bf16 %v598_v34, %v598_v34  ;;  %p3454_p2 = por %p3453_p1, %p3452_p0 }
  0x34   : > { %3013 = vmatpush3.bf16.msra.mxu1 %v3332_v27 }
  0x35   : > { %2991 = vmatpush3.bf16.msra.mxu0 %v3329_v19  ;;  %3038 = vmatprep.subr.bf16.mxu1 %v3509_v1  ;;  %p3455_p3 = pnand %p3454_p2, %p3448_p13 }
  0x36   : > { %2992 = vmatprep.subr.bf16.mxu0 %v3509_v1 }
  0x37   : > { %3015 = vmatmul.mubr.msk.bf16.vlgmr.msra.gmra.mrb[0].mxu1 %vm3759_vm4, %v2618_v33 }
  0x38   : > { %3039 = vmatpush3.bf16.msra.mxu1 %v3334_v35  ;;  %3054 = vmatprep.mubr.msk.bf16.mxu1 %vm3510_vm0, %v3509_v1  ;;  %v2655_v35 = vld [vmem:[%s4390_s4] ss:$0 sm:$0xff] }
  0x39   : > { %2993 = vmatpush3.bf16.msra.mxu0 %v3331_v26  ;;  %3040 = vmatprep.subr.bf16.mxu1 %v3509_v1 }
  0x3a   : > { %3018 = vmatprep.subr.bf16.mxu0 %v3509_v1 }
  0x3c   : > { %2995 = vmatmul.mubr.bf16.vlgmr.msra.gmra.mrb[0].mxu0 %v615_v37  ;;  %3041 = vmatpush3.bf16.msra.mxu1 %v3336_v39 }
  0x3d   : > { %3019 = vmatpush3.bf16.msra.mxu0 %v3333_v36  ;;  %3034 = vmatprep.mubr.msk.bf16.mxu0 %vm3510_vm0, %v3509_v1 }
  0x3e   : > { %3020 = vmatprep.subr.bf16.mxu0 %v3509_v1  ;;  %3042 = vmatprep.subr.bf16.mxu1 %v3509_v1 }
  0x40   : > { %3043 = vmatpush3.bf16.msra.mxu1 %v3338_v43 }
  0x41   : > { %3021 = vmatpush3.bf16.msra.mxu0 %v3335_v42  ;;  %3044 = vmatprep.subr.bf16.mxu1 %v3509_v1  ;;  %v1068_v42 = vsub.s32 0, %v3730_v18 }
  0x42   : > { %3022 = vmatprep.subr.bf16.mxu0 %v3509_v1 }
  0x44   : > { %3045 = vmatpush3.bf16.msra.mxu1 %v3340_v45 }
  0x45   : > { %3023 = vmatpush3.bf16.msra.mxu0 %v3337_v44  ;;  %3046 = vmatprep.subr.bf16.mxu1 %v3509_v1 }
  0x46   : > { %3024 = vmatprep.subr.bf16.mxu0 %v3509_v1 }
  0x48   : > { %3047 = vmatpush3.bf16.msra.mxu1 %v3342_v47 }
  0x49   : > { %3025 = vmatpush3.bf16.msra.mxu0 %v3339_v46  ;;  %3048 = vmatprep.subr.bf16.mxu1 %v3509_v1 }
  0x4a   : > { %3026 = vmatprep.subr.bf16.mxu0 %v3509_v1 }
  0x4c   : > { %3049 = vmatpush3.bf16.msra.mxu1 %v3344_v49 }
  0x4d   : > { %3027 = vmatpush3.bf16.msra.mxu0 %v3341_v48  ;;  %3050 = vmatprep.subr.bf16.mxu1 %v3509_v1 }
  0x4e   : > { %3028 = vmatprep.subr.bf16.mxu0 %v3509_v1 }
  0x50   : > { %3051 = vmatpush3.bf16.msra.mxu1 %v3346_v51 }
  0x51   : > { %3029 = vmatpush3.bf16.msra.mxu0 %v3343_v50  ;;  %3052 = vmatprep.subr.bf16.mxu1 %v3509_v1 }
  0x52   : > { %3030 = vmatprep.subr.bf16.mxu0 %v3509_v1 }
  0x54   : > { %3053 = vmatpush3.bf16.msra.mxu1 %v3348_v54 }
  0x55   : > { %3031 = vmatpush3.bf16.msra.mxu0 %v3345_v52  ;;  %3078 = vmatprep.subr.bf16.mxu1 %v3509_v1 }
  0x56   : > { %3032 = vmatprep.subr.bf16.mxu0 %v3509_v1 }
  0x57   : > { %3055 = vmatmul.mubr.msk.bf16.vlgmr.msra.gmra.mrb[4].mxu1 %vm3833_vm7, %v2653_v58 }
  0x58   : > { %3094 = vmatprep.mubr.msk.bf16.mxu1 %vm3510_vm0, %v3509_v1  ;;  %3079 = vmatpush3.bf16.msra.mxu1 %v3349_v60 }
  0x59   : > { %3033 = vmatpush3.bf16.msra.mxu0 %v3347_v55  ;;  %3080 = vmatprep.subr.bf16.mxu1 %v3509_v1 }
  0x5a   : > { %3058 = vmatprep.subr.bf16.mxu0 %v3509_v1 }
  0x5c   : > { %3035 = vmatmul.mubr.bf16.vlgmr.msra.gmra.mrb[4].mxu0 %v725_v59  ;;  %3081 = vmatpush3.bf16.msra.mxu1 %v3351_v62 }
  0x5d   : > { %3074 = vmatprep.mubr.msk.bf16.mxu0 %vm3510_vm0, %v3509_v1  ;;  %3059 = vmatpush3.bf16.msra.mxu0 %v3350_v61 }
  0x5e   : > { %3060 = vmatprep.subr.bf16.mxu0 %v3509_v1  ;;  %3082 = vmatprep.subr.bf16.mxu1 %v3509_v1 }
  0x60   : > { %3083 = vmatpush3.bf16.msra.mxu1 %v3353_v0 }
  0x61   : > { %3061 = vmatpush3.bf16.msra.mxu0 %v3352_v63  ;;  %3084 = vmatprep.subr.bf16.mxu1 %v3509_v1 }
  0x62   : > { %3062 = vmatprep.subr.bf16.mxu0 %v3509_v1 }
  0x64   : > { %3085 = vmatpush3.bf16.msra.mxu1 %v3355_v3 }
  0x65   : > { %3063 = vmatpush3.bf16.msra.mxu0 %v3354_v2  ;;  %3086 = vmatprep.subr.bf16.mxu1 %v3509_v1 }
  0x66   : > { %3064 = vmatprep.subr.bf16.mxu0 %v3509_v1 }
  0x68   : > { %3087 = vmatpush3.bf16.msra.mxu1 %v3357_v5 }
  0x69   : > { %3065 = vmatpush3.bf16.msra.mxu0 %v3356_v4  ;;  %3088 = vmatprep.subr.bf16.mxu1 %v3509_v1 }
  0x6a   : > { %3066 = vmatprep.subr.bf16.mxu0 %v3509_v1 }
  0x6c   : > { %3089 = vmatpush3.bf16.msra.mxu1 %v3359_v7 }
  0x6d   : > { %3067 = vmatpush3.bf16.msra.mxu0 %v3358_v6  ;;  %3090 = vmatprep.subr.bf16.mxu1 %v3509_v1 }
  0x6e   : > { %3068 = vmatprep.subr.bf16.mxu0 %v3509_v1 }
  0x70   : > { %3091 = vmatpush3.bf16.msra.mxu1 %v3361_v9 }
  0x71   : > { %3069 = vmatpush3.bf16.msra.mxu0 %v3360_v8  ;;  %3092 = vmatprep.subr.bf16.mxu1 %v3509_v1 }
  0x72   : > { %3070 = vmatprep.subr.bf16.mxu0 %v3509_v1 }
  0x74   : > { %3093 = vmatpush3.bf16.msra.mxu1 %v3363_v14 }
  0x75   : > { %3071 = vmatpush3.bf16.msra.mxu0 %v3362_v10  ;;  %3118 = vmatprep.subr.bf16.mxu1 %v3509_v1 }
  0x76   : > { %3072 = vmatprep.subr.bf16.mxu0 %v3509_v1 }
  0x79   : > { %3073 = vmatpush3.bf16.msra.mxu0 %v3364_v15  ;;  %v3366_v15 = vld [vmem:[%s4391_s5 + $0x88] sm:$0xff]  }
  0x7a   : > { %3098 = vmatprep.subr.bf16.mxu0 %v3509_v1 }
 0x10a   : > { %v837_v16 = vpop.f32.mrb[0].mxu1 }
 0x10b   : > { %v3016_v19 = vpop.f32.mrb[1].mxu1 }
 0x10c   : > { %v840_v21 = vpop.f32.mrb[2].mxu1  ;;  %v3369_v19 = vld [vmem:[%s4391_s5 + $0xa0] sm:$0xff]  }
 0x10d   : > { %v3017_v23 = vpop.f32.mrb[3].mxu1 }
 0x10e   : > { %v3373_v23 = vld [vmem:[%s4397_s11] sm:$0xff]  }
 0x10f   : > { %v699_v17 = vpop.f32.mrb[0].mxu0 }
 0x110   : > { %v2996_v20 = vpop.f32.mrb[1].mxu0  ;;  %v700_v26 = vadd.f32 %v699_v17, %v616_v25  ;;  %v3368_v17 = vld [vmem:[%s4391_s5 + $0x98] sm:$0xff]   ;;  %v3375_v25 = vld [vmem:[%s4397_s11 + $0x10] sm:$0xff]  }
 0x111   : > { %v702_v22 = vpop.f32.mrb[2].mxu0  ;;  %v3370_v20 = vld [vmem:[%s4391_s5 + $0xa8] sm:$0xff]  }
 0x112   : > { %v2997_v24 = vpop.f32.mrb[3].mxu0  ;;  %v706_v30 = vmul.f32 0.2, %v700_v26  ;;  %vm705_vm8 = vcmp.ge.f32.partialorder %v700_v26, 0.0  ;;  %v3372_v22 = vld [vmem:[%s4391_s5 + $0xb8] sm:$0xff]  }
 0x113   : > { %v3374_v24 = vld [vmem:[%s4397_s11 + $0x8] sm:$0xff]  }
 0x114   : > { %v707_v43 = vsel %vm705_vm8, %v700_v26, %v706_v30  ;;  %v3376_v26 = vld [vmem:[%s4397_s11 + $0x18] sm:$0xff]  }
 0x115   : > { %v1069_v48 = vrot.slane %v707_v43, %v1068_v42  ;;  %v3380_v30 = vld [vmem:[%s4397_s11 + $0x38] sm:$0xff]   ;;  %v3394_v42 = vld [vmem:[%s4399_s13 + $0x68] sm:$0xff]   ;;  %v3396_v43 = vld [vmem:[%s4399_s13 + $0x70] sm:$0xff]  }
 0x12a   : > { %v1042_v27 = vpop.f32.mrb[4].mxu1 }
 0x12b   : > { %v3056_v29 = vpop.f32.mrb[5].mxu1 }
 0x12c   : > { %v1045_v34 = vpop.f32.mrb[6].mxu1  ;;  %v3379_v29 = vld [vmem:[%s4397_s11 + $0x30] sm:$0xff]  }
 0x12d   : > { %v3057_v37 = vpop.f32.mrb[7].mxu1 }
 0x12e   : > { %v3386_v37 = vld [vmem:[%s4399_s13 + $0x48] sm:$0xff]  }
 0x12f   : > { %v926_v28 = vpop.f32.mrb[4].mxu0 }
 0x130   : > { %v927_v31 = vadd.f32 %v926_v28, %v837_v16  ;;  %v3036_v33 = vpop.f32.mrb[5].mxu0  ;;  %v3367_v16 = vld [vmem:[%s4391_s5 + $0x90] sm:$0xff]   ;;  %v3378_v28 = vld [vmem:[%s4397_s11 + $0x28] sm:$0xff]  }
 0x131   : > { %v929_v36 = vpop.f32.mrb[6].mxu0  ;;  %v3382_v33 = vld [vmem:[%s4393_s7 + $0x8] sm:$0xff]  }
 0x132   : > { %v1049_v39 = vadd.f32 %v1042_v27, %v927_v31  ;;  %v930_v40 = vadd.f32 %v929_v36, %v840_v21  ;;  %v3037_v41 = vpop.f32.mrb[7].mxu0  ;;  %v3371_v21 = vld [vmem:[%s4391_s5 + $0xb0] sm:$0xff]   ;;  %v3377_v27 = vld [vmem:[%s4397_s11 + $0x20] sm:$0xff]   ;;  %v3385_v36 = vld [vmem:[%s4393_s7 + $0x18] sm:$0xff]  }
 0x133   : > { %v3381_v31 = vld [vmem:[%s4393_s7] sm:$0xff]  }
 0x134   : > { %v1058_v44 = vadd.f32 %v2655_v35, %v1049_v39  ;;  %v1050_v45 = vadd.f32 %v1045_v34, %v930_v40  ;;  %v3383_v34 = vld [vmem:[%s4393_s7 + $0x10] sm:$0xff]   ;;  %v3390_v40 = vld [vmem:[%s4399_s13 + $0x58] sm:$0xff]   ;;  %v3392_v41 = vld [vmem:[%s4399_s13 + $0x60] sm:$0xff]  }
 0x135   : > { %v3388_v39 = vld [vmem:[%s4399_s13 + $0x50] sm:$0xff]  }
 0x136   : > { %vm1060_vm9 = vcmp.ge.f32.partialorder %v1058_v44, 0.0  ;;  %v1062_v46 = vmul.f32 0.2, %v1058_v44  ;;  %v1059_v47 = vadd.f32 %v2655_v35, %v1050_v45  ;;  %v3384_v35 = vld [vmem:[%s4399_s13 + $0x40] sm:$0xff]  }
 0x138   : > { %v1064_v49 = vsel %vm1060_vm9, %v1058_v44, %v1062_v46  ;;  %vm1061_vm10 = vcmp.ge.f32.partialorder %v1059_v47, 0.0  ;;  %v1063_v50 = vmul.f32 0.2, %v1059_v47  ;;  %v3398_v44 = vld [vmem:[%s4399_s13 + $0x78] sm:$0xff]  }
 0x139   : > { %v1070_v51 = vmul.f32 %v1069_v48, %v1064_v49 }
 0x13a   : > { %v1065_v52 = vsel %vm1061_vm10, %v1059_v47, %v1063_v50 }
 0x13b   : > { %v2656_v54 = vmul.f32 -1.442695, %v1070_v51  ;;  %v1071_v55 = vmul.f32 %v1069_v48, %v1065_v52 }
 0x13d   : > { %3429 = vpow2.f32 %v2656_v54  ;;  %v2657_v56 = vmul.f32 -1.442695, %v1071_v55 }
 0x13f   : > { %3431 = vpow2.f32 %v2657_v56 }
 0x147   : > { %v3430_v57 = vpop.eup %3429 }
 0x148   : > { %v1078_v58 = vadd.f32 1.0, %v3430_v57  ;;  %v2720_v57 = vld [vmem:[%s4392_s6] ss:$0 sm:$0xff] }
 0x149   : > { %v3432_v59 = vpop.eup %3431 }
 0x14a   : > { %3433 = vrcp.f32 %v1078_v58  ;;  %v1079_v60 = vadd.f32 1.0, %v3432_v59 }
 0x14c   : > { %3435 = vrcp.f32 %v1079_v60 }
 0x154   : > { %v3434_v61 = vpop.eup %3433 }
 0x155   : > { %v1084_v62 = vmul.f32 %v3434_v61, %v3715_v11  ;;  %v3365_v11 = vld [vmem:[%s4391_s5 + $0x80] sm:$0xff]  }
 0x156   : > { %v3436_v63 = vpop.eup %3435 }
 0x157   : > { %v1085_v0 = vmul.f32 %v3436_v63, %v3717_v12  ;;  %v1104_v2 = vrot.slane %v1084_v62, 7  ;;  %v1305_v5 = vrot.slane %v1084_v62, 1 }
 0x159   : > { %v3934_v3 = vpack.c.bf16 %v1085_v0, %v1084_v62  ;;  %v1105_v4 = vrot.slane %v1085_v0, 7  ;;  %v1306_v6 = vrot.slane %v1085_v0, 1 }
 0x15b   : > { %3095 = vmatmul.mubr.bf16.vlgmr.msra.gmra.mrb[8].mxu1 %v3934_v3  ;;  %v1106_v7 = vsel %vm730_vm1, %v1104_v2, %v1105_v4  ;;  %v1107_v8 = vsel %vm730_vm1, %v1105_v4, %v1104_v2  ;;  %v1307_v12 = vsel %vm935_vm6, %v1305_v5, %v1306_v6  ;;  %v1308_v9 = vsel %vm935_vm6, %v1306_v6, %v1305_v5 }
 0x15c   : > { %v2683_v10 = vpack.c.bf16 %v1106_v7, %v1107_v8  ;;  %v2718_v14 = vpack.c.bf16 %v1308_v9, %v1307_v12  ;;  %3126 = vmatprep.mubr.msk.bf16.mxu1 %vm3510_vm0, %v3509_v1  ;;  %3119 = vmatpush3.bf16.msra.mxu1 %v3381_v31 }
 0x15d   : > { %3120 = vmatprep.subr.bf16.mxu1 %v3509_v1 }
 0x15e   : > { %3075 = vmatmul.mubr.msk.bf16.vlgmr.msra.gmra.mrb[8].mxu0 %vm3759_vm4, %v2683_v10 }
 0x15f   : > { %3099 = vmatpush3.bf16.msra.mxu0 %v3365_v11  ;;  %3114 = vmatprep.mubr.msk.bf16.mxu0 %vm3510_vm0, %v3509_v1 }
 0x160   : > { %3100 = vmatprep.subr.bf16.mxu0 %v3509_v1  ;;  %3121 = vmatpush3.bf16.msra.mxu1 %v3382_v33 }
 0x161   : > { %3122 = vmatprep.subr.bf16.mxu1 %v3509_v1 }
 0x163   : > { %3101 = vmatpush3.bf16.msra.mxu0 %v3366_v15 }
 0x164   : > { %3102 = vmatprep.subr.bf16.mxu0 %v3509_v1  ;;  %3123 = vmatpush3.bf16.msra.mxu1 %v3383_v34 }
 0x165   : > { %3124 = vmatprep.subr.bf16.mxu1 %v3509_v1 }
 0x167   : > { %3103 = vmatpush3.bf16.msra.mxu0 %v3367_v16 }
 0x168   : > { %3104 = vmatprep.subr.bf16.mxu0 %v3509_v1  ;;  %3125 = vmatpush3.bf16.msra.mxu1 %v3385_v36 }
 0x169   : > { %3130 = vmatprep.subr.bf16.mxu1 %v3509_v1 }
 0x16b   : > { %3105 = vmatpush3.bf16.msra.mxu0 %v3368_v17  ;;  %v3387_v17 = vld [vmem:[%s4393_s7 + $0x20] sm:$0xff]  }
 0x16c   : > { %3106 = vmatprep.subr.bf16.mxu0 %v3509_v1 }
 0x16f   : > { %3107 = vmatpush3.bf16.msra.mxu0 %v3369_v19 }
 0x170   : > { %3108 = vmatprep.subr.bf16.mxu0 %v3509_v1 }
 0x173   : > { %3109 = vmatpush3.bf16.msra.mxu0 %v3370_v20 }
 0x174   : > { %3110 = vmatprep.subr.bf16.mxu0 %v3509_v1 }
 0x177   : > { %3111 = vmatpush3.bf16.msra.mxu0 %v3371_v21 }
 0x178   : > { %3112 = vmatprep.subr.bf16.mxu0 %v3509_v1 }
 0x17b   : > { %3113 = vmatpush3.bf16.msra.mxu0 %v3372_v22  ;;  %v3389_v22 = vld [vmem:[%s4393_s7 + $0x28] sm:$0xff]  }
 0x17c   : > { %3166 = vmatprep.subr.bf16.mxu0 %v3509_v1 }
 0x17e   : > { %3115 = vmatmul.mubr.msk.bf16.vlgmr.msra.gmra.mrb[12].mxu0 %vm3833_vm7, %v2718_v14 }
 0x17f   : > { %3167 = vmatpush3.bf16.msra.mxu0 %v3373_v23  ;;  %3182 = vmatprep.mubr.msk.bf16.mxu0 %vm3510_vm0, %v3509_v1  ;;  %v3391_v23 = vld [vmem:[%s4393_s7 + $0x30] sm:$0xff]  }
 0x180   : > { %3168 = vmatprep.subr.bf16.mxu0 %v3509_v1 }
 0x183   : > { %3169 = vmatpush3.bf16.msra.mxu0 %v3374_v24  ;;  %v3393_v24 = vld [vmem:[%s4393_s7 + $0x38] sm:$0xff]  }
 0x184   : > { %3170 = vmatprep.subr.bf16.mxu0 %v3509_v1 }
 0x187   : > { %3171 = vmatpush3.bf16.msra.mxu0 %v3375_v25  ;;  %v3395_v25 = vld [vmem:[%s4393_s7 + $0x40] sm:$0xff]  }
 0x188   : > { %3172 = vmatprep.subr.bf16.mxu0 %v3509_v1 }
 0x18b   : > { %3173 = vmatpush3.bf16.msra.mxu0 %v3376_v26  ;;  %v2761_v26 = vld [vmem:[%s4398_s12] ss:$0 sm:$0xff] }
 0x18c   : > { %3174 = vmatprep.subr.bf16.mxu0 %v3509_v1 }
 0x18f   : > { %3175 = vmatpush3.bf16.msra.mxu0 %v3377_v27 }
 0x190   : > { %3176 = vmatprep.subr.bf16.mxu0 %v3509_v1 }
 0x193   : > { %3177 = vmatpush3.bf16.msra.mxu0 %v3378_v28 }
 0x194   : > { %3178 = vmatprep.subr.bf16.mxu0 %v3509_v1 }
 0x197   : > { %3179 = vmatpush3.bf16.msra.mxu0 %v3379_v29 }
 0x198   : > { %3180 = vmatprep.subr.bf16.mxu0 %v3509_v1 }
 0x19b   : > { %3181 = vmatpush3.bf16.msra.mxu0 %v3380_v30  ;;  %v3397_v30 = vld [vmem:[%s4393_s7 + $0x48] sm:$0xff]  }
 0x19c   : > { %3206 = vmatprep.subr.bf16.mxu0 %v3509_v1 }
 0x19e   : > { %3183 = vmatmul.mubr.bf16.vlgmr.msra.gmra.mrb[16].mxu0 %v3934_v3 }
 0x19f   : > { %3222 = vmatprep.mubr.msk.bf16.mxu0 %vm3510_vm0, %v3509_v1  ;;  %3207 = vmatpush3.bf16.msra.mxu0 %v3384_v35 }
 0x1a0   : > { %3208 = vmatprep.subr.bf16.mxu0 %v3509_v1 }
 0x1a3   : > { %3209 = vmatpush3.bf16.msra.mxu0 %v3386_v37 }
 0x1a4   : > { %3210 = vmatprep.subr.bf16.mxu0 %v3509_v1 }
 0x1a7   : > { %3211 = vmatpush3.bf16.msra.mxu0 %v3388_v39  ;;  %v3399_v39 = vld [vmem:[%s4393_s7 + $0x50] sm:$0xff]  }
 0x1a8   : > { %3212 = vmatprep.subr.bf16.mxu0 %v3509_v1 }
 0x1ab   : > { %3213 = vmatpush3.bf16.msra.mxu0 %v3390_v40 }
 0x1ac   : > { %3214 = vmatprep.subr.bf16.mxu0 %v3509_v1 }
 0x1af   : > { %3215 = vmatpush3.bf16.msra.mxu0 %v3392_v41 }
 0x1b0   : > { %3216 = vmatprep.subr.bf16.mxu0 %v3509_v1 }
 0x1b3   : > { %3217 = vmatpush3.bf16.msra.mxu0 %v3394_v42 }
 0x1b4   : > { %3218 = vmatprep.subr.bf16.mxu0 %v3509_v1 }
 0x1b7   : > { %3219 = vmatpush3.bf16.msra.mxu0 %v3396_v43 }
 0x1b8   : > { %3220 = vmatprep.subr.bf16.mxu0 %v3509_v1 }
 0x1bb   : > { %3221 = vmatpush3.bf16.msra.mxu0 %v3398_v44 }
 0x1bc   : > { %3246 = vmatprep.subr.bf16.mxu0 %v3509_v1 }
 0x22e   : > { %v1298_v45 = vpop.f32.mrb[8].mxu1 }
 0x22f   : > { %v3096_v46 = vpop.f32.mrb[9].mxu1 }
 0x230   : > { %v1301_v47 = vpop.f32.mrb[10].mxu1  ;;  %v3400_v46 = vld [vmem:[%s4393_s7 + $0x58] sm:$0xff]  }
 0x231   : > { %v1209_v48 = vpop.f32.mrb[8].mxu0  ;;  %v3097_v49 = vpop.f32.mrb[11].mxu1 }
 0x232   : > { %v1299_v50 = vadd.f32 %v1298_v45, %v1209_v48  ;;  %v3076_v51 = vpop.f32.mrb[9].mxu0 }
 0x233   : > { %v1212_v52 = vpop.f32.mrb[10].mxu0 }
 0x234   : > { %v1302_v54 = vadd.f32 %v1301_v47, %v1212_v52  ;;  %v3077_v55 = vpop.f32.mrb[11].mxu0 }
 0x235   : > { %v3402_v55 = vld [vmem:[%s4395_s9 + $0x8] sm:$0xff]  }
 0x251   : > { %v1411_v56 = vpop.f32.mrb[12].mxu0 }
 0x252   : > { %v1418_v58 = vadd.f32 %v1411_v56, %v1299_v50  ;;  %v3116_v59 = vpop.f32.mrb[13].mxu0  ;;  %v3403_v56 = vld [vmem:[%s4395_s9 + $0x10] sm:$0xff]  }
 0x253   : > { %v1414_v60 = vpop.f32.mrb[14].mxu0 }
 0x254   : > { %v1427_v61 = vadd.f32 %v2720_v57, %v1418_v58  ;;  %v1419_v62 = vadd.f32 %v1414_v60, %v1302_v54  ;;  %v3117_v63 = vpop.f32.mrb[15].mxu0  ;;  %v3401_v54 = vld [vmem:[%s4395_s9] sm:$0xff]  }
 0x256   : > { %vm1429_vm11 = vcmp.ge.f32.partialorder %v1427_v61, 0.0  ;;  %v1431_v0 = vmul.f32 0.2, %v1427_v61  ;;  %v1428_v2 = vadd.f32 %v2720_v57, %v1419_v62  ;;  %v3404_v57 = vld [vmem:[%s4395_s9 + $0x18] sm:$0xff]  }
 0x258   : > { %v1433_v3 = vsel %vm1429_vm11, %v1427_v61, %v1431_v0  ;;  %vm1430_vm12 = vcmp.ge.f32.partialorder %v1428_v2, 0.0  ;;  %v1432_v4 = vmul.f32 0.2, %v1428_v2 }
 0x259   : > { %v1445_v5 = vrot.slane %v1433_v3, 7  ;;  %v1597_v7 = vrot.slane %v1433_v3, 1 }
 0x25a   : > { %v1434_v6 = vsel %vm1430_vm12, %v1428_v2, %v1432_v4 }
 0x25b   : > { %v1444_v8 = vpack.c.bf16 %v1434_v6, %v1433_v3  ;;  %v1446_v11 = vrot.slane %v1434_v6, 7  ;;  %v1598_v12 = vrot.slane %v1434_v6, 1 }
 0x25d   : > { %v1448_v9 = vsel %vm730_vm1, %v1446_v11, %v1445_v5  ;;  %v1600_v10 = vsel %vm935_vm6, %v1598_v12, %v1597_v7  ;;  %v1447_v14 = vsel %vm730_vm1, %v1445_v5, %v1446_v11  ;;  %v4081_v15 = vsel %vm935_vm6, %v1597_v7, %v1598_v12  ;;  %v2752_v12 = vld [vmem:[%s4394_s8] ss:$0 sm:$0xff] }
 0x25e   : > { %v1449_v16 = vsel %vm734_vm2, %v1448_v9, 0.0  ;;  %v1602_v19 = vsel %vm939_vm5, %v1600_v10, 0.0 }
 0x25f   : > { %v1459_v20 = vpack.c.bf16 %v1447_v14, %v1449_v16  ;;  %v1612_v21 = vpack.c.bf16 %v1602_v19, %v4081_v15 }
 0x261   : > { %3127 = vmatmul.mubr.msk.bf16.vlgmr.msra.gmra.mrb[12].mxu1 %vm1484_vm13, %v1459_v20 }
 0x262   : > { %3131 = vmatpush3.bf16.msra.mxu1 %v3387_v17  ;;  %3138 = vmatprep.mubr.msk.bf16.mxu1 %vm3510_vm0, %v3509_v1 }
 0x263   : > { %3132 = vmatprep.subr.bf16.mxu1 %v3509_v1 }
 0x266   : > { %3133 = vmatpush3.bf16.msra.mxu1 %v3389_v22 }
 0x267   : > { %3134 = vmatprep.subr.bf16.mxu1 %v3509_v1 }
 0x26a   : > { %3135 = vmatpush3.bf16.msra.mxu1 %v3391_v23 }
 0x26b   : > { %3136 = vmatprep.subr.bf16.mxu1 %v3509_v1 }
 0x26e   : > { %3137 = vmatpush3.bf16.msra.mxu1 %v3393_v24  ;;  %v3405_v24 = vld [vmem:[%s4399_s13] sm:$0xff]  }
 0x26f   : > { %3142 = vmatprep.subr.bf16.mxu1 %v3509_v1 }
 0x271   : > { %3139 = vmatmul.mubr.msk.bf16.vlgmr.msra.gmra.mrb[16].mxu1 %vm1484_vm13, %v1444_v8  ;;  %v1899_v27 = vpop.f32.mrb[16].mxu0 }
 0x272   : > { %3143 = vmatpush3.bf16.msra.mxu1 %v3395_v25  ;;  %v1900_v28 = vadd.f32 %v2761_v26, %v1899_v27  ;;  %v3184_v29 = vpop.f32.mrb[17].mxu0  ;;  %3150 = vmatprep.mubr.msk.bf16.mxu1 %vm3510_vm0, %v3509_v1  ;;  %v3407_v27 = vld [vmem:[%s4399_s13 + $0x10] sm:$0xff]  }
 0x273   : > { %v1902_v31 = vpop.f32.mrb[18].mxu0  ;;  %3144 = vmatprep.subr.bf16.mxu1 %v3509_v1  ;;  %v3409_v29 = vld [vmem:[%s4399_s13 + $0x20] sm:$0xff]  }
 0x274   : > { %vm1906_vm14 = vcmp.ge.f32.partialorder %v1900_v28, 0.0  ;;  %v1908_v33 = vmul.f32 0.2, %v1900_v28  ;;  %v1903_v34 = vadd.f32 %v2761_v26, %v1902_v31  ;;  %v3185_v35 = vpop.f32.mrb[19].mxu0  ;;  %v3406_v26 = vld [vmem:[%s4399_s13 + $0x8] sm:$0xff]   ;;  %v3411_v31 = vld [vmem:[%s4399_s13 + $0x30] sm:$0xff]  }
 0x275   : > { %v3414_v35 = vld [vmem:[%s4399_s13 + $0x88] sm:$0xff]  }
 0x276   : > { %v1910_v36 = vsel %vm1906_vm14, %v1900_v28, %v1908_v33  ;;  %vm1907_vm15 = vcmp.ge.f32.partialorder %v1903_v34, 0.0  ;;  %v1909_v37 = vmul.f32 0.2, %v1903_v34  ;;  %3145 = vmatpush3.bf16.msra.mxu1 %v3397_v30  ;;  %v3408_v28 = vld [vmem:[%s4399_s13 + $0x18] sm:$0xff]   ;;  %v3410_v30 = vld [vmem:[%s4399_s13 + $0x28] sm:$0xff]  }
 0x277   : > { %1912 = vst [vmem:[%s4126_s24] sm:$0xff] %v1910_v36  ;;  %3146 = vmatprep.subr.bf16.mxu1 %v3509_v1  ;;  %v1932_v40 = vrot.slane %v1910_v36, 7  ;;  %v2133_v42 = vrot.slane %v1910_v36, 1  ;;  %v3412_v33 = vld [vmem:[%s4399_s13 + $0x38] sm:$0xff]  }
 0x278   : > { %v1911_v41 = vsel %vm1907_vm15, %v1903_v34, %v1909_v37  ;;  %v3413_v34 = vld [vmem:[%s4399_s13 + $0x80] sm:$0xff]  }
 0x279   : > { %1913 = vst [vmem:[%s4126_s24 + $0x8] sm:$0xff] %v1911_v41  ;;  %v1933_v43 = vrot.slane %v1911_v41, 7  ;;  %v2134_v44 = vrot.slane %v1911_v41, 1  ;;  %v1931_v45 = vpack.c.bf16 %v1911_v41, %v1910_v36  ;;  %v3415_v36 = vld [vmem:[%s4399_s13 + $0x90] sm:$0xff]   ;;  %v3417_v37 = vld [vmem:[%s4399_s13 + $0xa0] sm:$0xff]   ;;  %v3420_v41 = vld [vmem:[%s4399_s13 + $0xb8] sm:$0xff]  }
 0x27a   : > { %3147 = vmatpush3.bf16.msra.mxu1 %v3399_v39  ;;  %v3418_v39 = vld [vmem:[%s4399_s13 + $0xa8] sm:$0xff]  }
 0x27b   : > { %3223 = vmatmul.mubr.bf16.vlgmr.msra.gmra.mrb[20].mxu0 %v1931_v45  ;;  %3148 = vmatprep.subr.bf16.mxu1 %v3509_v1  ;;  %v4137_v47 = vsel %vm730_vm1, %v1932_v40, %v1933_v43  ;;  %v4141_v48 = vsel %vm730_vm1, %v1933_v43, %v1932_v40  ;;  %v4145_v49 = vsel %vm935_vm6, %v2133_v42, %v2134_v44  ;;  %v3419_v40 = vld [vmem:[%s4399_s13 + $0xb0] sm:$0xff]   ;;  %v3421_v43 = vld [vmem:[%s4401_s15] sm:$0xff]   ;;  %v3424_v45 = vld [vmem:[%s4401_s15 + $0x18] sm:$0xff]  }
 0x27c   : > { %v2795_v50 = vpack.c.bf16 %v4137_v47, %v4141_v48  ;;  %v4151_v51 = vsel %vm935_vm6, %v2134_v44, %v2133_v42  ;;  %3262 = vmatprep.mubr.msk.bf16.mxu0 %vm3510_vm0, %v3509_v1  ;;  %v3512_v42 = vmov 0   ;;  %3247 = vmatpush3.bf16.msra.mxu0 %v3421_v43  ;;  %v3422_v44 = vld [vmem:[%s4401_s15 + $0x8] sm:$0xff]   ;;  %v3427_v48 = vld [vmem:[%s4401_s15 + $0x30] sm:$0xff]  }
 0x27d   : > { %v2830_v52 = vpack.c.bf16 %v4151_v51, %v4145_v49  ;;  %3314 = vset.pattern.permute.xlu1 %v3512_v42  ;;  %3313 = vset.pattern.permute.xlu0 %v3512_v42  ;;  %v3426_v47 = vld [vmem:[%s4401_s15 + $0x28] sm:$0xff]   ;;  %v3428_v49 = vld [vmem:[%s4401_s15 + $0x38] sm:$0xff]  }
 0x27e   : > { %3149 = vmatpush3.bf16.msra.mxu1 %v3400_v46  ;;  %3248 = vmatprep.subr.bf16.mxu0 %v3509_v1  ;;  %v3425_v46 = vld [vmem:[%s4401_s15 + $0x20] sm:$0xff]  }
 0x27f   : > { %3154 = vmatprep.subr.bf16.mxu1 %v3509_v1 }
 0x280   : > { %3249 = vmatpush3.bf16.msra.mxu0 %v3422_v44 }
 0x281   : > { %3151 = vmatmul.mubr.msk.bf16.vlgmr.msra.gmra.mrb[20].mxu1 %vm1484_vm13, %v1612_v21  ;;  %3250 = vmatprep.subr.bf16.mxu0 %v3509_v1 }
 0x282   : > { %3162 = vmatprep.mubr.msk.bf16.mxu1 %vm3510_vm0, %v3509_v1  ;;  %3155 = vmatpush3.bf16.msra.mxu1 %v3401_v54 }
 0x283   : > { %3156 = vmatprep.subr.bf16.mxu1 %v3509_v1 }
 0x284   : > { %3251 = vmatpush3.bf16.msra.mxu0 %v3423_v53 }
 0x285   : > { %3252 = vmatprep.subr.bf16.mxu0 %v3509_v1 }
 0x286   : > { %3157 = vmatpush3.bf16.msra.mxu1 %v3402_v55 }
 0x287   : > { %3158 = vmatprep.subr.bf16.mxu1 %v3509_v1 }
 0x288   : > { %3253 = vmatpush3.bf16.msra.mxu0 %v3424_v45 }
 0x289   : > { %3254 = vmatprep.subr.bf16.mxu0 %v3509_v1 }
 0x28a   : > { %3159 = vmatpush3.bf16.msra.mxu1 %v3403_v56 }
 0x28b   : > { %3160 = vmatprep.subr.bf16.mxu1 %v3509_v1 }
 0x28c   : > { %3255 = vmatpush3.bf16.msra.mxu0 %v3425_v46 }
 0x28d   : > { %3256 = vmatprep.subr.bf16.mxu0 %v3509_v1 }
 0x28e   : > { %3161 = vmatpush3.bf16.msra.mxu1 %v3404_v57 }
 0x28f   : > { %3186 = vmatprep.subr.bf16.mxu1 %v3509_v1 }
 0x290   : > { %3257 = vmatpush3.bf16.msra.mxu0 %v3426_v47 }
 0x291   : > { %3258 = vmatprep.subr.bf16.mxu0 %v3509_v1 }
 0x294   : > { %3259 = vmatpush3.bf16.msra.mxu0 %v3427_v48 }
 0x295   : > { %3260 = vmatprep.subr.bf16.mxu0 %v3509_v1 }
 0x298   : > { %3261 = vmatpush3.bf16.msra.mxu0 %v3428_v49 }
 0x334   : > { %v1522_v58 = vpop.f32.mrb[12].mxu1 }
 0x335   : > { %v3128_v59 = vpop.f32.mrb[13].mxu1 }
 0x336   : > { %v1525_v60 = vpop.f32.mrb[14].mxu1 }
 0x337   : > { %v3129_v61 = vpop.f32.mrb[15].mxu1 }
 0x344   : > { %v1590_v62 = vpop.f32.mrb[16].mxu1 }
 0x345   : > { %v1591_v63 = vadd.f32 %v1590_v62, %v1522_v58  ;;  %v3140_v0 = vpop.f32.mrb[17].mxu1 }
 0x346   : > { %v1593_v2 = vpop.f32.mrb[18].mxu1 }
 0x347   : > { %v1594_v3 = vadd.f32 %v1593_v2, %v1525_v60  ;;  %v3141_v4 = vpop.f32.mrb[19].mxu1 }
 0x34e   : > { %v4177_v5 = vpop.f32.mrb[20].mxu0 }
 0x34f   : > { %v3224_v6 = vpop.f32.mrb[21].mxu0 }
 0x350   : > { %v4179_v7 = vpop.f32.mrb[22].mxu0 }
 0x351   : > { %v3225_v8 = vpop.f32.mrb[23].mxu0 }
 0x354   : > { %v1674_v11 = vpop.f32.mrb[20].mxu1 }
 0x355   : > { %v1681_v9 = vadd.f32 %v1674_v11, %v1591_v63  ;;  %v3152_v10 = vpop.f32.mrb[21].mxu1 }
 0x356   : > { %v1677_v14 = vpop.f32.mrb[22].mxu1  ;;  %v2832_v10 = vld [vmem:[%s4400_s14] ss:$0 sm:$0xff] }
 0x357   : > { %v1690_v15 = vadd.f32 %v2752_v12, %v1681_v9  ;;  %v1682_v16 = vadd.f32 %v1677_v14, %v1594_v3  ;;  %v3153_v17 = vpop.f32.mrb[23].mxu1 }
 0x359   : > { %v1694_v19 = vmul.f32 0.2, %v1690_v15  ;;  %v1691_v20 = vadd.f32 %v2752_v12, %v1682_v16  ;;  %vm1692_vm3 = vcmp.ge.f32.partialorder %v1690_v15, 0.0  ;;  %v3514_v12 = vmov 1  }
 0x35b   : > { %vm1693_vm8 = vcmp.ge.f32.partialorder %v1691_v20, 0.0  ;;  %v1695_v21 = vmul.f32 0.2, %v1691_v20  ;;  %v1696_v22 = vsel %vm1692_vm3, %v1690_v15, %v1694_v19 }
 0x35d   : > { %v1697_v23 = vsel %vm1693_vm8, %v1691_v20, %v1695_v21 }
 0x35e   : > { %v1706_v25 = vpack.c.bf16 %v1697_v23, %v1696_v22 }
 0x360   : > { %3163 = vmatmul.mubr.msk.bf16.vlgmr.msra.gmra.mrb[24].mxu1 %vm1484_vm13, %v1706_v25 }
 0x361   : > { %3187 = vmatpush3.bf16.msra.mxu1 %v3405_v24  ;;  %3202 = vmatprep.mubr.msk.bf16.mxu1 %vm3510_vm0, %v3509_v1 }
 0x362   : > { %3188 = vmatprep.subr.bf16.mxu1 %v3509_v1 }
 0x365   : > { %3189 = vmatpush3.bf16.msra.mxu1 %v3406_v26 }
 0x366   : > { %3190 = vmatprep.subr.bf16.mxu1 %v3509_v1 }
 0x369   : > { %3191 = vmatpush3.bf16.msra.mxu1 %v3407_v27 }
 0x36a   : > { %3192 = vmatprep.subr.bf16.mxu1 %v3509_v1 }
 0x36d   : > { %3193 = vmatpush3.bf16.msra.mxu1 %v3408_v28 }
 0x36e   : > { %3194 = vmatprep.subr.bf16.mxu1 %v3509_v1 }
 0x371   : > { %3195 = vmatpush3.bf16.msra.mxu1 %v3409_v29 }
 0x372   : > { %3196 = vmatprep.subr.bf16.mxu1 %v3509_v1 }
 0x375   : > { %3197 = vmatpush3.bf16.msra.mxu1 %v3410_v30 }
 0x376   : > { %3198 = vmatprep.subr.bf16.mxu1 %v3509_v1 }
 0x379   : > { %3199 = vmatpush3.bf16.msra.mxu1 %v3411_v31 }
 0x37a   : > { %3200 = vmatprep.subr.bf16.mxu1 %v3509_v1 }
 0x37d   : > { %3201 = vmatpush3.bf16.msra.mxu1 %v3412_v33 }
 0x37e   : > { %3226 = vmatprep.subr.bf16.mxu1 %v3509_v1 }
 0x380   : > { %3203 = vmatmul.mubr.msk.bf16.vlgmr.msra.gmra.mrb[28].mxu1 %vm3759_vm4, %v2795_v50  ;;  %v2753_v50 = vld [vmem:[%s4396_s10] ss:$0 sm:$0xff] }
 0x381   : > { %3227 = vmatpush3.bf16.msra.mxu1 %v3413_v34  ;;  %3242 = vmatprep.mubr.msk.bf16.mxu1 %vm3510_vm0, %v3509_v1 }
 0x382   : > { %3228 = vmatprep.subr.bf16.mxu1 %v3509_v1 }
 0x385   : > { %3229 = vmatpush3.bf16.msra.mxu1 %v3414_v35 }
 0x386   : > { %3230 = vmatprep.subr.bf16.mxu1 %v3509_v1 }
 0x389   : > { %3231 = vmatpush3.bf16.msra.mxu1 %v3415_v36 }
 0x38a   : > { %3232 = vmatprep.subr.bf16.mxu1 %v3509_v1 }
 0x38d   : > { %3233 = vmatpush3.bf16.msra.mxu1 %v3416_v32 }
 0x38e   : > { %3234 = vmatprep.subr.bf16.mxu1 %v3509_v1 }
 0x391   : > { %3235 = vmatpush3.bf16.msra.mxu1 %v3417_v37 }
 0x392   : > { %3236 = vmatprep.subr.bf16.mxu1 %v3509_v1 }
 0x395   : > { %3237 = vmatpush3.bf16.msra.mxu1 %v3418_v39 }
 0x396   : > { %3238 = vmatprep.subr.bf16.mxu1 %v3509_v1 }
 0x399   : > { %3239 = vmatpush3.bf16.msra.mxu1 %v3419_v40 }
 0x39a   : > { %3240 = vmatprep.subr.bf16.mxu1 %v3509_v1 }
 0x39d   : > { %3241 = vmatpush3.bf16.msra.mxu1 %v3420_v41 }
 0x3a0   : > { %3243 = vmatmul.mubr.msk.bf16.vlgmr.msra.gmra.mrb[32].mxu1 %vm3833_vm7, %v2830_v52 }
 0x433   : > { %v1775_v51 = vpop.f32.mrb[24].mxu1 }
 0x434   : > { %v1776_v52 = vadd.f32 %v2753_v50, %v1775_v51  ;;  %v3164_v54 = vpop.f32.mrb[25].mxu1 }
 0x435   : > { %v1778_v55 = vpop.f32.mrb[26].mxu1 }
 0x436   : > { %v2759_v56 = vmul.f32 -1.442695, %v1776_v52  ;;  %v1779_v57 = vadd.f32 %v2753_v50, %v1778_v55  ;;  %v3165_v58 = vpop.f32.mrb[27].mxu1 }
 0x438   : > { %3437 = vpow2.f32 %v2759_v56  ;;  %v2760_v59 = vmul.f32 -1.442695, %v1779_v57 }
 0x43a   : > { %3439 = vpow2.f32 %v2760_v59 }
 0x442   : > { %v3438_v1 = vpop.eup %3437 }
 0x443   : > { %v1788_v60 = vadd.f32 1.0, %v3438_v1 }
 0x444   : > { %v3440_v61 = vpop.eup %3439 }
 0x445   : > { %3441 = vrcp.f32 %v1788_v60  ;;  %v1789_v62 = vadd.f32 1.0, %v3440_v61 }
 0x447   : > { %3443 = vrcp.f32 %v1789_v62 }
 0x44f   : > { %v3442_v63 = vpop.eup %3441 }
 0x450   : > { %2381 = vrot.lane.b32.xlu0 %v3442_v63, %s3513_s19 }
 0x451   : > { %v3444_v0 = vpop.eup %3443 }
 0x452   : > { %2409 = vperm.xlu1 %3314, %v3444_v0  }
 0x453   : > { %v2037_v2 = vpop.f32.mrb[28].mxu1 }
 0x454   : > { %v2127_v3 = vadd.f32 %v4177_v5, %v2037_v2  ;;  %v3204_v4 = vpop.f32.mrb[29].mxu1  ;;  %2383 = vrot.lane.b32.xlu0 %v3444_v0, %s3513_s19  ;;  %s4312_s19 = scalar_lea.sflag [#allocation3], %s567_s25 }
 0x455   : > { %v2040_v6 = vpop.f32.mrb[30].mxu1 }
 0x456   : > { %v2130_v8 = vadd.f32 %v4179_v7, %v2040_v6  ;;  %v3205_v11 = vpop.f32.mrb[31].mxu1 }
 0x458   : > { %2405 = vperm.xlu0 %3313, %v3442_v63  }
 0x45c   : > { %3316 = vset.pattern.permute.xlu0 %v3514_v12 }
 0x45d   : > { %2420 = vperm.xlu0 %3316, %v3444_v0  }
 0x473   : > { %v2239_v9 = vpop.f32.mrb[32].mxu1 }
 0x474   : > { %v2246_v14 = vadd.f32 %v2239_v9, %v2127_v3  ;;  %v3244_v15 = vpop.f32.mrb[33].mxu1 }
 0x475   : > { %v2242_v16 = vpop.f32.mrb[34].mxu1 }
 0x476   : > { %v2255_v17 = vadd.f32 %v2832_v10, %v2246_v14  ;;  %v2247_v5 = vadd.f32 %v2242_v16, %v2130_v8  ;;  %v3245_v19 = vpop.f32.mrb[35].mxu1 }
 0x478   : > { %v2259_v20 = vmul.f32 0.2, %v2255_v17  ;;  %v2256_v21 = vadd.f32 %v2832_v10, %v2247_v5  ;;  %vm2257_vm0 = vcmp.ge.f32.partialorder %v2255_v17, 0.0 }
 0x47a   : > { %vm2258_vm4 = vcmp.ge.f32.partialorder %v2256_v21, 0.0  ;;  %v2260_v7 = vmul.f32 0.2, %v2256_v21  ;;  %v2261_v22 = vsel %vm2257_vm0, %v2255_v17, %v2259_v20 }
 0x47c   : > { %v2262_v23 = vsel %vm2258_vm4, %v2256_v21, %v2260_v7 }
 0x47d   : > { %v2279_v24 = vpack.c.bf16 %v2262_v23, %v2261_v22 }
 0x47f   : > { %3263 = vmatmul.mubr.bf16.vlgmr.msra.gmra.mrb[24].mxu0 %v2279_v24 }
 0x4c2   : > { %v2382_v25 = vpop.permute.xlu0 %2381 }
 0x4c3   : > { %v2387_v26 = vadd.f32 %v3442_v63, %v2382_v25 }
 0x4c5   : > { %v2389_v27 = vmul.f32 0.5, %v2387_v26 }
 0x4c6   : > { %v2384_v28 = vpop.permute.xlu0 %2383 }
 0x4c7   : > { %v2388_v29 = vadd.f32 %v3444_v0, %v2384_v28  ;;  %2393 = vperm.xlu1 %3314, %v2389_v27  }
 0x4c9   : > { %v2390_v30 = vmul.f32 0.5, %v2388_v29 }
 0x4cb   : > { %2398 = vperm.xlu1 %3314, %v2390_v30  }
 0x4cf   : > { %3315 = vset.pattern.permute.xlu1 %v3514_v12 }
 0x4d0   : > { %2416 = vperm.xlu1 %3315, %v3442_v63  }
 0x4d1   : > { %3458 = shalt.err (!%p3455_p3)
}
 0x4d2   : > { %s3459_s25 = scalar_lea.hbm %s4305_s23, 256  ;;  %s3463_s1 = scalar_lea.hbm %s4403_s17, 512 }
 0x4d3   : > { %p3460_p4 = scmp.ne.s32.totalorder %s4305_s23, %s3459_s25  ;;  %p3464_p9 = scmp.lt.u32.totalorder %s4305_s23, %s4403_s17 }
 0x4d4   : > { %p3465_p10 = scmp.lt.u32.totalorder %s3463_s1, %s3459_s25  ;;  %p3467_p12 = scmp.lt.u32.totalorder %s3459_s25, %s4305_s23 }
 0x4d5   : > { %p3461_p7 = pnand %p3460_p4, %p3651_p5 }
 0x4d6   : > { %p3466_p11 = por %p3465_p10, %p3464_p9 }
 0x4d7   : > { %p3462_p8 = pneg %p3461_p7 }
 0x4d8   : > { %p3468_p13 = por %p3467_p12, %p3466_p11 }
 0x4da   : > { %p3469_p0 = pnand %p3468_p13, %p3462_p8 }
 0x4dc   : > { %3472 = shalt.err (!%p3469_p0)
}
 0x4dd   : > { %s3516_s21 = smov 128   ;;  %s3517_s30 = smov 8   ;;  %v2410_v31 = vpop.permute.xlu1 %2409  ;;  %v2377_v34 = vand.u32 127, %v728_v13  ;;  %v2833_v36 = vld [vmem:[%s4402_s16] ss:$0 sm:$0xff]  ;;  %v2406_v37 = vpop.permute.xlu0 %2405  ;;  %vm2458_vm11 = vcmp.lt.s32.totalorder %v3772_v38, 14 }
 0x4de   : > { %3266 = dma.vmem_to_hbm [thread:$0]  (%p3651_p5), %s4308_s27, 256, %s4305_s23, %s4312_s19, %s3516_s21, %s3516_s21, %s3517_s30   ;;  %vm2443_vm12 = vcmp.lt.s32.totalorder %v3730_v18, 2  ;;  %vm2446_vm13 = vcmp.ge.s32.totalorder %v3730_v18, 2  ;;  %vm2454_vm14 = vcmp.lt.s32.totalorder %v3730_v18, 6 }
 0x4df   : > { %vm2378_vm7 = vcmp.eq.s32.totalorder %v2377_v34, 9  ;;  %vm2403_vm9 = vcmp.eq.s32.totalorder %v2377_v34, 10  ;;  %vm2414_vm10 = vcmp.eq.s32.totalorder %v2377_v34, 11  ;;  %s4431_s27 = sld [smem:[#allocation14_spill]] }
 0x4e1   : > { %v2421_v47 = vpop.permute.xlu0 %2420 }
 0x4e5   : > { %s586_s19 = scalar_lea.vmem %s4431_s27, %s2847_s22 }
 0x546   : > { %v2394_v33 = vpop.permute.xlu1 %2393 }
 0x54a   : > { %v2399_v35 = vpop.permute.xlu1 %2398 }
 0x54f   : > { %v2417_v53 = vpop.permute.xlu1 %2416 }
 0x552   : > { %v2369_v32 = vpop.f32.mrb[24].mxu0 }
 0x553   : > { %v2370_v39 = vadd.f32 %v2833_v36, %v2369_v32  ;;  %v3264_v40 = vpop.f32.mrb[25].mxu0 }
 0x554   : > { %v2372_v41 = vpop.f32.mrb[26].mxu0 }
 0x555   : > { %v2401_v42 = vsel %vm2378_vm7, %v2394_v33, %v2370_v39  ;;  %v2373_v43 = vadd.f32 %v2833_v36, %v2372_v41  ;;  %v3265_v44 = vpop.f32.mrb[27].mxu0 }
 0x556   : > { %v2412_v45 = vsel %vm2403_vm9, %v2406_v37, %v2401_v42 }
 0x557   : > { %v2423_v46 = vsel %vm2414_vm10, %v2417_v53, %v2412_v45  ;;  %v2402_v13 = vsel %vm2378_vm7, %v2399_v35, %v2373_v43 }
 0x558   : > { %v2413_v48 = vsel %vm2403_vm9, %v2410_v31, %v2402_v13  ;;  %v2425_v49 = vrot.slane %v2423_v46, 7  ;;  %v2433_v50 = vrot.slane %v2423_v46, 1  ;;  %v2441_v57 = vrot.slane %v2423_v46, 6 }
 0x559   : > { %v2424_v51 = vsel %vm2414_vm10, %v2421_v47, %v2413_v48  ;;  %v2452_v58 = vrot.slane %v2423_v46, 2 }
 0x55a   : > { %v2426_v52 = vrot.slane %v2424_v51, 7  ;;  %v2434_v54 = vrot.slane %v2424_v51, 1  ;;  %v2442_v55 = vrot.slane %v2424_v51, 6  ;;  %v2453_v56 = vrot.slane %v2424_v51, 2 }
 0x55c   : > { %v2427_v59 = vsel %vm730_vm1, %v2425_v49, %v2426_v52  ;;  %v2428_v1 = vsel %vm730_vm1, %v2426_v52, %v2425_v49  ;;  %v2435_v60 = vsel %vm935_vm6, %v2433_v50, %v2434_v54  ;;  %v2436_v61 = vsel %vm935_vm6, %v2434_v54, %v2433_v50 }
 0x55d   : > { %v2429_v62 = vsel %vm734_vm2, %v2428_v1, 0.0  ;;  %v2432_v63 = vadd.f32 %v2427_v59, %v2424_v51  ;;  %v2438_v0 = vsel %vm939_vm5, %v2436_v61, 0.0  ;;  %v2444_v2 = vsel %vm2443_vm12, %v2441_v57, %v2442_v55 }
 0x55e   : > { %v2431_v3 = vadd.f32 %v2429_v62, %v2423_v46  ;;  %v2445_v4 = vsel %vm2443_vm12, %v2442_v55, %v2441_v57  ;;  %v2455_v6 = vsel %vm2454_vm14, %v2452_v58, %v2453_v56  ;;  %v2456_v8 = vsel %vm2454_vm14, %v2453_v56, %v2452_v58 }
 0x55f   : > { %v2440_v11 = vadd.f32 %v2438_v0, %v2432_v63  ;;  %v2460_v12 = vsel %vm2458_vm11, %v2456_v8, 0.0  ;;  %v2448_v10 = vsel %vm2446_vm13, %v2445_v4, 0.0 }
 0x560   : > { %v2439_v9 = vadd.f32 %v2435_v60, %v2431_v3 }
 0x561   : > { %v2451_v14 = vadd.f32 %v2444_v2, %v2440_v11 }
 0x562   : > { %v2450_v15 = vadd.f32 %v2448_v10, %v2439_v9 }
 0x563   : > { %v2462_v16 = vadd.f32 %v2460_v12, %v2451_v14 }
 0x564   : > { %v2461_v17 = vadd.f32 %v2455_v6, %v2450_v15 }
 0x565   : > { %v2464_v5 = vmul.f32 0.2, %v2462_v16 }
 0x566   : > { %v2463_v19 = vmul.f32 0.2, %v2461_v17 }
 0x567   : > { %2466 = vst [vmem:[%s586_s19 + $0x8] sm:$0xff] %v2464_v5 }
 0x568   : > { %2465 = vst [vmem:[%s586_s19] sm:$0xff] %v2463_v19 }
 0x569 PF: > { %s4432_s25 = sld [smem:[#allocation7_spill]]  ;;  %s4433_s1 = sld [smem:[#allocation5_spill]] }
 0x56f   : > { %p3272_p5 = scmp.ge.s32.totalorder %s4432_s25, 2  ;;  %s2504_s29 = sand.u32 1, %s4433_s1  }
 0x570   : > { %s2505_s21 = scalar_lea.sflag [#allocation3], %s2504_s29 }
 0x571   : > { %p3269_p1 = pnand %p3272_p5, %p3655_p6 }
 0x573   : > { %3490 = dma.done.wait (!%p3269_p1), %s2505_s21, 256  }
 0x574   : > { %3492 = vsyncadd (!%p3269_p1), %s2505_s21, 4294967040  ;;  %s4435_s30 = sld [smem:[#allocation8_spill]]  ;;  %s4436_s20 = sld [smem:[#allocation6_spill]] }
 0x575   : > { %s4437_s29 = sld [smem:[#allocation9_spill]]  ;;  %s4438_s27 = smov %s3499_s28 }
 0x57a   : > { %p29_p2 = scmp.ge.s32.totalorder %s4435_s30, 4   ;;  %s4439_s28 = smov %s4436_s20 }
 0x57c   :  { %31 = sbr.rel (!%p29_p2) target bundleno = 8 (0x8), region = 143 }
 0x583   :  { %2518 = vsyncpa [#allocation3], 1 }
 0x584   :  { %2520 = vsyncpa [#allocation3 + $0x1], 1 }

</bundles_post_ra>
